<compile_context>
chip_gen: v6e
topology: v6e:2x2x1
jax: 0.10.0
libtpu: 0.0.40
codegen_flags: <defaults>
</compile_context>

<pallas_src>
import jax
import jax.numpy as jnp
from jax.experimental import pallas as pl
from jax.experimental.pallas import tpu as pltpu

D_IN, H1, H2, D_OUT = 28 * 28, 512, 256, 10
D_IN_PAD = 896      # 7 * 128 (lane-aligned K for fc1)
D_OUT_PAD = 128     # lane-dense output (sliced back to 10 outside the kernel)


def mlp_kernel(x_ref, w1_ref, b1_ref, w2_ref, b2_ref, w3_ref, b3_ref, o_ref):
    # fc1 + ReLU  (bf16 inputs, f32 accumulate / elementwise)
    h = jnp.dot(x_ref[...], w1_ref[...], preferred_element_type=jnp.float32)
    h = jnp.maximum(h + b1_ref[...], 0.0)
    # fc2 + ReLU
    h = jnp.dot(h.astype(jnp.bfloat16), w2_ref[...],
                preferred_element_type=jnp.float32)
    h = jnp.maximum(h + b2_ref[...], 0.0)
    # fc3 (logits, padded to 128 lanes, no activation)
    h = jnp.dot(h.astype(jnp.bfloat16), w3_ref[...],
                preferred_element_type=jnp.float32)
    o_ref[...] = (h + b3_ref[...]).astype(o_ref.dtype)


def neural_net_forward(x, params, *, batch_tile=512):
    """x: (B, 1, 28, 28) or (B, 784) float32. Returns (B, 10) float32 logits."""
    w1, b1, w2, b2, w3, b3 = params
    x2d = x.reshape(-1, D_IN).astype(jnp.float32)
    B = x2d.shape[0]

    # Pick the batch tile: single grid step for small batches, 512 otherwise.
    if B <= batch_tile:
        tile = max(8, ((B + 7) // 8) * 8)
    else:
        tile = batch_tile
    B_pad = ((B + tile - 1) // tile) * tile

    # Pad batch rows and input columns (784 -> 896) with zeros.
    x2d = jnp.pad(x2d, ((0, B_pad - B), (0, D_IN_PAD - D_IN)))
    xb = x2d.astype(jnp.bfloat16)

    # Pad / cast parameters. Zero-padded K rows and N cols change nothing
    # numerically (zeros contribute 0 to the dot products).
    w1p = jnp.pad(w1, ((0, D_IN_PAD - D_IN), (0, 0))).astype(jnp.bfloat16)
    w2b = w2.astype(jnp.bfloat16)
    w3p = jnp.pad(w3, ((0, 0), (0, D_OUT_PAD - D_OUT))).astype(jnp.bfloat16)
    b1f = b1.astype(jnp.float32)
    b2f = b2.astype(jnp.float32)
    b3p = jnp.pad(b3.astype(jnp.float32), ((0, 0), (0, D_OUT_PAD - D_OUT)))

    grid = (B_pad // tile,)
    resident = lambda i: (0, 0)  # weights/biases: same block every grid step

    out = pl.pallas_call(
        mlp_kernel,
        out_shape=jax.ShapeDtypeStruct((B_pad, D_OUT_PAD), jnp.float32),
        grid_spec=pltpu.PrefetchScalarGridSpec(
            num_scalar_prefetch=0,
            grid=grid,
            in_specs=[
                pl.BlockSpec((tile, D_IN_PAD), lambda i: (i, 0)),  # x tile
                pl.BlockSpec((D_IN_PAD, H1), resident),            # W1 (bf16)
                pl.BlockSpec((1, H1), resident),                   # b1 (f32)
                pl.BlockSpec((H1, H2), resident),                  # W2 (bf16)
                pl.BlockSpec((1, H2), resident),                   # b2 (f32)
                pl.BlockSpec((H2, D_OUT_PAD), resident),           # W3 (bf16)
                pl.BlockSpec((1, D_OUT_PAD), resident),            # b3 (f32)
            ],
            out_specs=pl.BlockSpec((tile, D_OUT_PAD), lambda i: (i, 0)),
        ),
        compiler_params=pltpu.CompilerParams(
            dimension_semantics=("parallel",),  # batch axis shards across TCs
        ),
    )(xb, w1p, b1f, w2b, b2f, w3p, b3p)

    return out[:B, :D_OUT]


def init_params(key):
    """Deterministic synthetic parameters; shapes match NeuralNet.__init__
    (stored as (in, out), i.e. transpose of PyTorch nn.Linear .weight)."""
    ks = jax.random.split(key, 6)
    w1 = jax.random.normal(ks[0], (D_IN, H1), jnp.float32) * 0.02
    b1 = jax.random.normal(ks[1], (1, H1), jnp.float32) * 0.01
    w2 = jax.random.normal(ks[2], (H1, H2), jnp.float32) * 0.02
    b2 = jax.random.normal(ks[3], (1, H2), jnp.float32) * 0.01
    w3 = jax.random.normal(ks[4], (H2, D_OUT), jnp.float32) * 0.02
    b3 = jax.random.normal(ks[5], (1, D_OUT), jnp.float32) * 0.01
    return (w1, b1, w2, b2, w3, b3)


def reference_forward(x, params):
    w1, b1, w2, b2, w3, b3 = params
    x2d = x.reshape(-1, D_IN)
    h = jnp.maximum(x2d @ w1 + b1, 0.0)
    h = jnp.maximum(h @ w2 + b2, 0.0)
    return h @ w3 + b3


if __name__ == "__main__":
    key = jax.random.PRNGKey(0)
    k_x, k_p = jax.random.split(key)
    # Small MNIST-like batch: (B, 1, 28, 28) NCHW
    x = jax.random.normal(k_x, (8, 1, 28, 28), jnp.float32)
    params = init_params(k_p)

    out = neural_net_forward(x, params)
    out = jax.block_until_ready(out)

    ref = reference_forward(x, params)
    assert out.shape == (8, 10)
    # Matmul inputs are bf16 (f32 accumulation), so compare with a tolerance
    # appropriate for bf16 mantissa precision.
    assert jnp.allclose(out, ref, atol=2e-2, rtol=2e-2), "mismatch vs reference"
    print("KERNEL_OK")
</pallas_src>

<mosaic_0001>
module attributes {stable_mosaic.version = 11 : i64} {
  func.func @mlp_kernel(%arg0: i32, %arg1: memref<8x896xbf16, #tpu.memory_space<vmem>>, %arg2: memref<896x512xbf16, #tpu.memory_space<vmem>>, %arg3: memref<1x512xf32, #tpu.memory_space<vmem>>, %arg4: memref<512x256xbf16, #tpu.memory_space<vmem>>, %arg5: memref<1x256xf32, #tpu.memory_space<vmem>>, %arg6: memref<256x128xbf16, #tpu.memory_space<vmem>>, %arg7: memref<1x128xf32, #tpu.memory_space<vmem>>, %arg8: memref<8x128xf32, #tpu.memory_space<vmem>>) attributes {dimension_semantics = [#tpu.dimension_semantics<parallel>], iteration_bounds = array<i64: 1>, scalar_prefetch = 0 : i64, scratch_operands = 0 : i64, tpu.core_type = #tpu.core_type<tc>, window_params = [{transform_indices = @transform_0, window_bounds = array<i64: 8, 896>}, {pipeline_mode = #tpu.pipeline_mode<synchronous>, transform_indices = @transform_1, window_bounds = array<i64: 896, 512>}, {pipeline_mode = #tpu.pipeline_mode<synchronous>, transform_indices = @transform_2, window_bounds = array<i64: 1, 512>}, {pipeline_mode = #tpu.pipeline_mode<synchronous>, transform_indices = @transform_3, window_bounds = array<i64: 512, 256>}, {pipeline_mode = #tpu.pipeline_mode<synchronous>, transform_indices = @transform_4, window_bounds = array<i64: 1, 256>}, {pipeline_mode = #tpu.pipeline_mode<synchronous>, transform_indices = @transform_5, window_bounds = array<i64: 256, 128>}, {pipeline_mode = #tpu.pipeline_mode<synchronous>, transform_indices = @transform_6, window_bounds = array<i64: 1, 128>}, {transform_indices = @transform_7, window_bounds = array<i64: 8, 128>}]} {
    %c0 = arith.constant 0 : index
    %c0_0 = arith.constant 0 : index
    %0 = vector.load %arg1[%c0, %c0_0] : memref<8x896xbf16, #tpu.memory_space<vmem>>, vector<8x896xbf16>
    %c0_1 = arith.constant 0 : index
    %c0_2 = arith.constant 0 : index
    %1 = vector.load %arg2[%c0_1, %c0_2] : memref<896x512xbf16, #tpu.memory_space<vmem>>, vector<896x512xbf16>
    %cst = arith.constant dense<0.000000e+00> : vector<8x512xf32>
    %2 = tpu.matmul %0, %1, %cst {dimension_numbers = #tpu.dot_dimension_numbers<[1], [0], [0], [1], [0, 0, 1, 1], [], []>} : vector<8x896xbf16>, vector<896x512xbf16>, vector<8x512xf32> -> vector<8x512xf32>
    %c0_3 = arith.constant 0 : index
    %c0_4 = arith.constant 0 : index
    %3 = vector.load %arg3[%c0_3, %c0_4] : memref<1x512xf32, #tpu.memory_space<vmem>>, vector<1x512xf32>
    %4 = vector.broadcast %3 : vector<1x512xf32> to vector<8x512xf32>
    %5 = arith.addf %2, %4 : vector<8x512xf32>
    %cst_5 = arith.constant 0.000000e+00 : f32
    %6 = vector.broadcast %cst_5 : f32 to vector<8x512xf32>
    %7 = arith.maximumf %5, %6 : vector<8x512xf32>
    %8 = arith.truncf %7 : vector<8x512xf32> to vector<8x512xbf16>
    %c0_6 = arith.constant 0 : index
    %c0_7 = arith.constant 0 : index
    %9 = vector.load %arg4[%c0_6, %c0_7] : memref<512x256xbf16, #tpu.memory_space<vmem>>, vector<512x256xbf16>
    %cst_8 = arith.constant dense<0.000000e+00> : vector<8x256xf32>
    %10 = tpu.matmul %8, %9, %cst_8 {dimension_numbers = #tpu.dot_dimension_numbers<[1], [0], [0], [1], [0, 0, 1, 1], [], []>} : vector<8x512xbf16>, vector<512x256xbf16>, vector<8x256xf32> -> vector<8x256xf32>
    %c0_9 = arith.constant 0 : index
    %c0_10 = arith.constant 0 : index
    %11 = vector.load %arg5[%c0_9, %c0_10] : memref<1x256xf32, #tpu.memory_space<vmem>>, vector<1x256xf32>
    %12 = vector.broadcast %11 : vector<1x256xf32> to vector<8x256xf32>
    %13 = arith.addf %10, %12 : vector<8x256xf32>
    %cst_11 = arith.constant 0.000000e+00 : f32
    %14 = vector.broadcast %cst_11 : f32 to vector<8x256xf32>
    %15 = arith.maximumf %13, %14 : vector<8x256xf32>
    %16 = arith.truncf %15 : vector<8x256xf32> to vector<8x256xbf16>
    %c0_12 = arith.constant 0 : index
    %c0_13 = arith.constant 0 : index
    %17 = vector.load %arg6[%c0_12, %c0_13] : memref<256x128xbf16, #tpu.memory_space<vmem>>, vector<256x128xbf16>
    %cst_14 = arith.constant dense<0.000000e+00> : vector<8x128xf32>
    %18 = tpu.matmul %16, %17, %cst_14 {dimension_numbers = #tpu.dot_dimension_numbers<[1], [0], [0], [1], [0, 0, 1, 1], [], []>} : vector<8x256xbf16>, vector<256x128xbf16>, vector<8x128xf32> -> vector<8x128xf32>
    %c0_15 = arith.constant 0 : index
    %c0_16 = arith.constant 0 : index
    %19 = vector.load %arg7[%c0_15, %c0_16] : memref<1x128xf32, #tpu.memory_space<vmem>>, vector<1x128xf32>
    %20 = vector.broadcast %19 : vector<1x128xf32> to vector<8x128xf32>
    %21 = arith.addf %18, %20 : vector<8x128xf32>
    %c0_17 = arith.constant 0 : index
    %c0_18 = arith.constant 0 : index
    %22 = vector.load %arg8[%c0_17, %c0_18] : memref<8x128xf32, #tpu.memory_space<vmem>>, vector<8x128xf32>
    tpu.vector_store %arg8[%c0_17, %c0_18], %21 {strides = array<i32>} : memref<8x128xf32, #tpu.memory_space<vmem>>, vector<8x128xf32>,
    return
  }
  func.func @transform_0(%arg0: i32) -> (i32, i32) {
    %c0_i32 = arith.constant 0 : i32
    %c0_i32_0 = arith.constant 0 : i32
    return %arg0, %c0_i32 : i32, i32
  }
  func.func @transform_1(%arg0: i32) -> (i32, i32) {
    %c0_i32 = arith.constant 0 : i32
    %c0_i32_0 = arith.constant 0 : i32
    %c0_i32_1 = arith.constant 0 : i32
    return %c0_i32, %c0_i32_0 : i32, i32
  }
  func.func @transform_2(%arg0: i32) -> (i32, i32) {
    %c0_i32 = arith.constant 0 : i32
    %c0_i32_0 = arith.constant 0 : i32
    %c0_i32_1 = arith.constant 0 : i32
    return %c0_i32, %c0_i32_0 : i32, i32
  }
  func.func @transform_3(%arg0: i32) -> (i32, i32) {
    %c0_i32 = arith.constant 0 : i32
    %c0_i32_0 = arith.constant 0 : i32
    %c0_i32_1 = arith.constant 0 : i32
    return %c0_i32, %c0_i32_0 : i32, i32
  }
  func.func @transform_4(%arg0: i32) -> (i32, i32) {
    %c0_i32 = arith.constant 0 : i32
    %c0_i32_0 = arith.constant 0 : i32
    %c0_i32_1 = arith.constant 0 : i32
    return %c0_i32, %c0_i32_0 : i32, i32
  }
  func.func @transform_5(%arg0: i32) -> (i32, i32) {
    %c0_i32 = arith.constant 0 : i32
    %c0_i32_0 = arith.constant 0 : i32
    %c0_i32_1 = arith.constant 0 : i32
    return %c0_i32, %c0_i32_0 : i32, i32
  }
  func.func @transform_6(%arg0: i32) -> (i32, i32) {
    %c0_i32 = arith.constant 0 : i32
    %c0_i32_0 = arith.constant 0 : i32
    %c0_i32_1 = arith.constant 0 : i32
    return %c0_i32, %c0_i32_0 : i32, i32
  }
  func.func @transform_7(%arg0: i32) -> (i32, i32) {
    %c0_i32 = arith.constant 0 : i32
    %c0_i32_0 = arith.constant 0 : i32
    return %arg0, %c0_i32 : i32, i32
  }
}

</mosaic_0001>

<bundles_post_ra>
// kernel: tpu_custom_call.1
= control target key start
LH: loop header
LB: loop body
LE: loop exit
PB: predicated region body
PF: predicated region fallthrough
CT: control target
= control target key end

     0   :  { %12 = vsyncpa [#allocation3], 0  ;;  %s3567_s0 = inlined_call_operand.hbm [shape: bf16[8,896], index: 0, kind: input, shape index: {}]   ;;  %s3568_s1 = inlined_call_operand.hbm [shape: bf16[896,512], index: 1, kind: input, shape index: {}]   ;;  %s3569_s2 = inlined_call_operand.hbm [shape: f32[1,512], index: 2, kind: input, shape index: {}]   ;;  %s3570_s3 = inlined_call_operand.hbm [shape: bf16[512,256], index: 3, kind: input, shape index: {}]   ;;  %s3571_s4 = inlined_call_operand.vmem [shape: f32[1,256], index: 4, kind: input, shape index: {}]   ;;  %s3572_s5 = inlined_call_operand.hbm [shape: bf16[256,128], index: 5, kind: input, shape index: {}]   ;;  %s3573_s6 = inlined_call_operand.vmem [shape: f32[1,128], index: 6, kind: input, shape index: {}]   ;;  %s3574_s7 = inlined_call_operand.hbm [shape: f32[8,128], index: 7, kind: output, shape index: {}]  }
   0x1   :  { %13 = vsyncpa [#allocation6], 0 }
   0x2   :  { %14 = vsyncpa [#allocation9], 0 }
   0x3   :  { %15 = vsyncpa [#allocation4], 0  ;;  %s3428_s24 = smov [#allocation5]  }
   0x4   :  { %s31_s25 = sshll.u32 %s3428_s24, 4  ;;  %s32_s25 = int_to_ptr.vmem [resolvable:$true] %s31_s25 }
   0x5   :  { %s3308_s26 = scalar_lea.vmem %s32_s25, 28672  ;;  %p3313_p1 = scmp.lt.s32.totalorder %s32_s25, %s32_s25 }
   0x6   :  { %p3309_p0 = scmp.ne.s32.totalorder %s32_s25, %s3308_s26  ;;  %p3314_p2 = scmp.lt.s32.totalorder %s3308_s26, %s3308_s26 }
   0x8   :  { %p3315_p3 = por %p3314_p2, %p3313_p1 }
   0xa   :  { %p3316_p4 = pnand %p3315_p3, %p3309_p0 }
   0xc   :  { %3319 = shalt.err (!%p3316_p4)
}
   0xd   :  { %s3429_s27 = smov 256   ;;  %s3430_s28 = smov 16  }
   0xe   :  { %37 = dma.hbm_to_vmem [thread:$0]  %s3568_s1, 28672, %s32_s25, [#allocation6], %s3429_s27, %s3429_s27, %s3430_s28  }
   0xf   :  { %s3431_s8 = smov [#allocation8]  }
  0x10   :  { %s53_s9 = sshll.u32 %s3431_s8, 4  ;;  %s54_s9 = int_to_ptr.vmem [resolvable:$true] %s53_s9 }
  0x11   :  { %s3328_s10 = scalar_lea.vmem %s54_s9, 8192  ;;  %p3333_p6 = scmp.lt.s32.totalorder %s54_s9, %s54_s9 }
  0x12   :  { %p3329_p5 = scmp.ne.s32.totalorder %s54_s9, %s3328_s10  ;;  %p3334_p7 = scmp.lt.s32.totalorder %s3328_s10, %s3328_s10 }
  0x14   :  { %p3335_p8 = por %p3334_p7, %p3333_p6 }
  0x16   :  { %p3336_p9 = pnand %p3335_p8, %p3329_p5 }
  0x18   :  { %3339 = shalt.err (!%p3336_p9)
}
  0x19   :  { %s3432_s11 = smov 128   ;;  %s3433_s12 = smov 8  }
  0x1a   :  { %59 = dma.hbm_to_vmem [thread:$0]  %s3570_s3, 8192, %s54_s9, [#allocation9], %s3432_s11, %s3432_s11, %s3433_s12  }
  0x1b   :  { %s3434_s15 = smov [#allocation2]   ;;  %s3435_s17 = smov [#allocation7]  }
  0x1c   :  { %s22_s16 = sshll.u32 %s3434_s15, 4  ;;  %s44_s1 = sshll.u32 %s3435_s17, 4  ;;  %s23_s16 = int_to_ptr.vmem [resolvable:$true] %s22_s16  ;;  %s45_s1 = int_to_ptr.vmem [resolvable:$true] %s44_s1 }
  0x1d   :  { %s3348_s18 = scalar_lea.vmem %s23_s16, 448  ;;  %p3353_p11 = scmp.lt.s32.totalorder %s23_s16, %s23_s16 }
  0x1e   :  { %p3349_p10 = scmp.ne.s32.totalorder %s23_s16, %s3348_s18  ;;  %p3354_p12 = scmp.lt.s32.totalorder %s3348_s18, %s3348_s18 }
  0x20   :  { %p3355_p13 = por %p3354_p12, %p3353_p11 }
  0x22   :  { %p3356_p0 = pnand %p3355_p13, %p3349_p10 }
  0x24   :  { %3359 = shalt.err (!%p3356_p0)
}
  0x25   :  { %25 = dma.hbm_to_vmem [thread:$0]  %s3567_s0, 448, %s23_s16, [#allocation3]  }
  0x26   :  { %s3368_s21 = scalar_lea.vmem %s45_s1, 64  ;;  %p3373_p2 = scmp.lt.s32.totalorder %s45_s1, %s45_s1 }
  0x27   :  { %p3369_p1 = scmp.ne.s32.totalorder %s45_s1, %s3368_s21  ;;  %p3374_p3 = scmp.lt.s32.totalorder %s3368_s21, %s3368_s21 }
  0x29   :  { %p3375_p4 = por %p3374_p3, %p3373_p2 }
  0x2b   :  { %p3376_p5 = pnand %p3375_p4, %p3369_p1 }
  0x2d   :  { %3379 = shalt.err (!%p3376_p5)
}
  0x2e   :  { %47 = dma.hbm_to_vmem [thread:$0]  %s3569_s2, 64, %s45_s1, [#allocation6]  }
  0x2f   :  { %s3436_s23 = smov [#allocation10]  }
  0x30   :  { %s67_s24 = sshll.u32 %s3436_s23, 4  ;;  %s68_s24 = int_to_ptr.vmem [resolvable:$true] %s67_s24 }
  0x31   :  { %s3388_s25 = scalar_lea.vmem %s68_s24, 2048  ;;  %p3393_p7 = scmp.lt.s32.totalorder %s68_s24, %s68_s24 }
  0x32   :  { %p3389_p6 = scmp.ne.s32.totalorder %s68_s24, %s3388_s25  ;;  %p3394_p8 = scmp.lt.s32.totalorder %s3388_s25, %s3388_s25 }
  0x34   :  { %p3395_p9 = por %p3394_p8, %p3393_p7 }
  0x36   :  { %p3396_p10 = pnand %p3395_p9, %p3389_p6 }
  0x38   :  { %3399 = shalt.err (!%p3396_p10)
}
  0x39   :  { %s3437_s0 = smov 64   ;;  %s3438_s26 = smov 4  }
  0x3a   :  { %73 = dma.hbm_to_vmem [thread:$0]  %s3572_s5, 2048, %s68_s24, [#allocation9], %s3437_s0, %s3437_s0, %s3438_s26  }
  0x3b   :  { %3420 = dma.done.wait [#allocation3], 448  }
  0x3c   :  { %3421 = vsyncadd [#allocation3], 4294966848 }
  0x3d   :  { %3422 = dma.done.wait [#allocation6], 28736  }
  0x3e   :  { %3423 = vsyncadd [#allocation6], 4294938560 }
  0x3f   :  { %3424 = dma.done.wait [#allocation9], 10240  }
  0x40   :  { %3425 = vsyncadd [#allocation9], 4294957056  ;;  %v2845_v0 = vld [vmem:[#allocation5 + $0xe4] ss:$16 sps:$4 sm:$0xff]   ;;  %v2849_v2 = vld [vmem:[#allocation5 + $0xe0] ss:$16 sps:$4 sm:$0xff]  }
  0x41   :  { %v2847_v1 = vld [vmem:[#allocation5 + $0x2e4] ss:$16 sps:$4 sm:$0xff]   ;;  %1487 = vmatprep.subr.bf16.mxu0 %v2845_v0  ;;  %v2850_v3 = vld [vmem:[#allocation5 + $0x2e0] ss:$16 sps:$4 sm:$0xff]   ;;  %s3440_s30 = smov [#allocation11]  }
  0x42   :  { %1528 = vmatprep.subr.bf16.mxu1 %v2847_v1  ;;  %v2851_v4 = vld [vmem:[#allocation5 + $0xc4] ss:$16 sps:$4 sm:$0xff]   ;;  %1488 = vmatpush1.bf16.msra.mxu0 %v2849_v2  ;;  %v2855_v6 = vld [vmem:[#allocation5 + $0xc0] ss:$16 sps:$4 sm:$0xff]   ;;  %s2487_s8 = sshll.u32 %s3440_s30, 4  ;;  %s2488_s8 = int_to_ptr.vmem [resolvable:$true] %s2487_s8 }
  0x43   :  { %1529 = vmatpush1.bf16.msra.mxu1 %v2850_v3  ;;  %v2853_v5 = vld [vmem:[#allocation5 + $0x2c4] ss:$16 sps:$4 sm:$0xff]   ;;  %1489 = vmatprep.subr.bf16.mxu0 %v2851_v4  ;;  %v2856_v7 = vld [vmem:[#allocation5 + $0x2c0] ss:$16 sps:$4 sm:$0xff]   ;;  %s3400_s9 = scalar_lea.vmem %s2488_s8, 128  ;;  %p3405_p12 = scmp.lt.s32.totalorder %s2488_s8, %s2488_s8 }
  0x44   :  { %1530 = vmatprep.subr.bf16.mxu1 %v2853_v5  ;;  %v2857_v8 = vld [vmem:[#allocation5 + $0xa4] ss:$16 sps:$4 sm:$0xff]   ;;  %v2861_v10 = vld [vmem:[#allocation5 + $0xa0] ss:$16 sps:$4 sm:$0xff]   ;;  %p3401_p11 = scmp.ne.s32.totalorder %s2488_s8, %s3400_s9  ;;  %p3406_p13 = scmp.lt.s32.totalorder %s3400_s9, %s3400_s9 }
  0x45   :  { %v2859_v9 = vld [vmem:[#allocation5 + $0x2a4] ss:$16 sps:$4 sm:$0xff]   ;;  %v2862_v11 = vld [vmem:[#allocation5 + $0x2a0] ss:$16 sps:$4 sm:$0xff]  }
  0x46   :  { %1490 = vmatpush1.bf16.msra.mxu0 %v2855_v6  ;;  %v2863_v12 = vld [vmem:[#allocation5 + $0x84] ss:$16 sps:$4 sm:$0xff]   ;;  %v2867_v14 = vld [vmem:[#allocation5 + $0x80] ss:$16 sps:$4 sm:$0xff]   ;;  %p3407_p0 = por %p3406_p13, %p3405_p12 }
  0x47   :  { %1531 = vmatpush1.bf16.msra.mxu1 %v2856_v7  ;;  %1491 = vmatprep.subr.bf16.mxu0 %v2857_v8  ;;  %v2865_v13 = vld [vmem:[#allocation5 + $0x284] ss:$16 sps:$4 sm:$0xff]   ;;  %v2868_v15 = vld [vmem:[#allocation5 + $0x280] ss:$16 sps:$4 sm:$0xff]  }
  0x48   :  { %1532 = vmatprep.subr.bf16.mxu1 %v2859_v9  ;;  %v2869_v16 = vld [vmem:[#allocation5 + $0x64] ss:$16 sps:$4 sm:$0xff]   ;;  %v2873_v18 = vld [vmem:[#allocation5 + $0x60] ss:$16 sps:$4 sm:$0xff]   ;;  %p3408_p1 = pnand %p3407_p0, %p3401_p11 }
  0x49   :  { %v2871_v17 = vld [vmem:[#allocation5 + $0x264] ss:$16 sps:$4 sm:$0xff]   ;;  %v2874_v19 = vld [vmem:[#allocation5 + $0x260] ss:$16 sps:$4 sm:$0xff]  }
  0x4a   :  { %1492 = vmatpush1.bf16.msra.mxu0 %v2861_v10  ;;  %v2875_v20 = vld [vmem:[#allocation5 + $0x44] ss:$16 sps:$4 sm:$0xff]   ;;  %v2879_v22 = vld [vmem:[#allocation5 + $0x40] ss:$16 sps:$4 sm:$0xff]  }
  0x4b   :  { %1533 = vmatpush1.bf16.msra.mxu1 %v2862_v11  ;;  %1493 = vmatprep.subr.bf16.mxu0 %v2863_v12  ;;  %v2877_v21 = vld [vmem:[#allocation5 + $0x244] ss:$16 sps:$4 sm:$0xff]   ;;  %v2880_v23 = vld [vmem:[#allocation5 + $0x240] ss:$16 sps:$4 sm:$0xff]  }
  0x4c   :  { %1534 = vmatprep.subr.bf16.mxu1 %v2865_v13  ;;  %v2881_v24 = vld [vmem:[#allocation5 + $0x24] ss:$16 sps:$4 sm:$0xff]   ;;  %v2885_v26 = vld [vmem:[#allocation5 + $0x20] ss:$16 sps:$4 sm:$0xff]  }
  0x4d   :  { %v2883_v25 = vld [vmem:[#allocation5 + $0x224] ss:$16 sps:$4 sm:$0xff]   ;;  %v2886_v27 = vld [vmem:[#allocation5 + $0x220] ss:$16 sps:$4 sm:$0xff]  }
  0x4e   :  { %1494 = vmatpush1.bf16.msra.mxu0 %v2867_v14  ;;  %v2887_v28 = vld [vmem:[#allocation5 + $0x4] ss:$16 sps:$4 sm:$0xff]   ;;  %v2891_v30 = vld [vmem:[#allocation5] ss:$16 sps:$4 sm:$0xff]  }
  0x4f   :  { %1535 = vmatpush1.bf16.msra.mxu1 %v2868_v15  ;;  %1495 = vmatprep.subr.bf16.mxu0 %v2869_v16  ;;  %v2889_v29 = vld [vmem:[#allocation5 + $0x204] ss:$16 sps:$4 sm:$0xff]   ;;  %v2892_v31 = vld [vmem:[#allocation5 + $0x200] ss:$16 sps:$4 sm:$0xff]   ;;  %v3439_v16 = vmov 0  }
  0x50   :  { %1536 = vmatprep.subr.bf16.mxu1 %v2871_v17  ;;  %v2893_v32 = vld [vmem:[#allocation5 + $0x1e4] ss:$16 sps:$4 sm:$0xff]   ;;  %v2897_v34 = vld [vmem:[#allocation5 + $0x1e0] ss:$16 sps:$4 sm:$0xff]  }
  0x51   :  { %v2895_v33 = vld [vmem:[#allocation5 + $0x3e4] ss:$16 sps:$4 sm:$0xff]   ;;  %v2898_v35 = vld [vmem:[#allocation5 + $0x3e0] ss:$16 sps:$4 sm:$0xff]  }
  0x52   :  { %1496 = vmatpush1.bf16.msra.mxu0 %v2873_v18  ;;  %v2899_v36 = vld [vmem:[#allocation5 + $0x1c4] ss:$16 sps:$4 sm:$0xff]   ;;  %v2903_v38 = vld [vmem:[#allocation5 + $0x1c0] ss:$16 sps:$4 sm:$0xff]  }
  0x53   :  { %1537 = vmatpush1.bf16.msra.mxu1 %v2874_v19  ;;  %1497 = vmatprep.subr.bf16.mxu0 %v2875_v20  ;;  %v2901_v37 = vld [vmem:[#allocation5 + $0x3c4] ss:$16 sps:$4 sm:$0xff]   ;;  %v2904_v39 = vld [vmem:[#allocation5 + $0x3c0] ss:$16 sps:$4 sm:$0xff]  }
  0x54   :  { %1538 = vmatprep.subr.bf16.mxu1 %v2877_v21  ;;  %v2905_v40 = vld [vmem:[#allocation5 + $0x1a4] ss:$16 sps:$4 sm:$0xff]   ;;  %v2909_v42 = vld [vmem:[#allocation5 + $0x1a0] ss:$16 sps:$4 sm:$0xff]  }
  0x55   :  { %v2907_v41 = vld [vmem:[#allocation5 + $0x3a4] ss:$16 sps:$4 sm:$0xff]   ;;  %v2910_v43 = vld [vmem:[#allocation5 + $0x3a0] ss:$16 sps:$4 sm:$0xff]  }
  0x56   :  { %1498 = vmatpush1.bf16.msra.mxu0 %v2879_v22  ;;  %v2911_v44 = vld [vmem:[#allocation5 + $0x184] ss:$16 sps:$4 sm:$0xff]   ;;  %v93_v48 = vld [vmem:[#allocation2 + $0x8] sm:$0xff] }
  0x57   :  { %1539 = vmatpush1.bf16.msra.mxu1 %v2880_v23  ;;  %1499 = vmatprep.subr.bf16.mxu0 %v2881_v24  ;;  %v2913_v45 = vld [vmem:[#allocation5 + $0x384] ss:$16 sps:$4 sm:$0xff]   ;;  %v2915_v49 = vld [vmem:[#allocation5 + $0x180] ss:$16 sps:$4 sm:$0xff]   ;;  %v3498_v51 = vcombine.high %v93_v48, %v93_v48  ;;  %v3504_v7 = vcombine.low %v93_v48, %v93_v48  ;;  %v3005_v48 = vld [vmem:[#allocation5 + $0xcc] ss:$16 sps:$4 sm:$0xff]  }
  0x58   :  { %1540 = vmatprep.subr.bf16.mxu1 %v2883_v25  ;;  %v92_v46 = vld [vmem:[#allocation2] sm:$0xff]  ;;  %v2916_v50 = vld [vmem:[#allocation5 + $0x380] ss:$16 sps:$4 sm:$0xff]  }
  0x59   :  { %v3496_v47 = vcombine.high %v92_v46, %v92_v46  ;;  %v2917_v52 = vld [vmem:[#allocation5 + $0x164] ss:$16 sps:$4 sm:$0xff]   ;;  %1560 = vmatprep.mubr.bf16.mxu1 %v3498_v51  ;;  %v2921_v54 = vld [vmem:[#allocation5 + $0x160] ss:$16 sps:$4 sm:$0xff]   ;;  %v3502_v6 = vcombine.low %v92_v46, %v92_v46 }
  0x5a   :  { %1500 = vmatpush1.bf16.msra.mxu0 %v2885_v26  ;;  %v2919_v53 = vld [vmem:[#allocation5 + $0x364] ss:$16 sps:$4 sm:$0xff]   ;;  %v2922_v55 = vld [vmem:[#allocation5 + $0x360] ss:$16 sps:$4 sm:$0xff]  }
  0x5b   :  { %1541 = vmatpush1.bf16.msra.mxu1 %v2886_v27  ;;  %1501 = vmatprep.subr.bf16.mxu0 %v2887_v28  ;;  %v2923_v56 = vld [vmem:[#allocation5 + $0x144] ss:$16 sps:$4 sm:$0xff]   ;;  %v2927_v58 = vld [vmem:[#allocation5 + $0x140] ss:$16 sps:$4 sm:$0xff]  }
  0x5c   :  { %1542 = vmatprep.subr.bf16.mxu1 %v2889_v29  ;;  %1519 = vmatprep.mubr.bf16.mxu0 %v3496_v47  ;;  %v2925_v57 = vld [vmem:[#allocation5 + $0x344] ss:$16 sps:$4 sm:$0xff]   ;;  %v2928_v59 = vld [vmem:[#allocation5 + $0x340] ss:$16 sps:$4 sm:$0xff]  }
  0x5d   :  { %v2929_v60 = vld [vmem:[#allocation5 + $0x124] ss:$16 sps:$4 sm:$0xff]   ;;  %v2933_v62 = vld [vmem:[#allocation5 + $0x120] ss:$16 sps:$4 sm:$0xff]  }
  0x5e   :  { %1502 = vmatpush1.bf16.msra.mxu0 %v2891_v30  ;;  %v2931_v61 = vld [vmem:[#allocation5 + $0x324] ss:$16 sps:$4 sm:$0xff]   ;;  %v2934_v63 = vld [vmem:[#allocation5 + $0x320] ss:$16 sps:$4 sm:$0xff]  }
  0x5f   :  { %1543 = vmatpush1.bf16.msra.mxu1 %v2892_v31  ;;  %1503 = vmatprep.subr.bf16.mxu0 %v2893_v32  ;;  %v2935_v0 = vld [vmem:[#allocation5 + $0x104] ss:$16 sps:$4 sm:$0xff]   ;;  %v2939_v2 = vld [vmem:[#allocation5 + $0x100] ss:$16 sps:$4 sm:$0xff]  }
  0x60   :  { %1544 = vmatprep.subr.bf16.mxu1 %v2895_v33  ;;  %v2937_v1 = vld [vmem:[#allocation5 + $0x304] ss:$16 sps:$4 sm:$0xff]   ;;  %v2940_v3 = vld [vmem:[#allocation5 + $0x300] ss:$16 sps:$4 sm:$0xff]  }
  0x61   :  { %v2947_v4 = vld [vmem:[#allocation5 + $0x4e4] ss:$16 sps:$4 sm:$0xff]   ;;  %v2945_v8 = vld [vmem:[#allocation5 + $0x4e0] ss:$16 sps:$4 sm:$0xff]  }
  0x62   :  { %1504 = vmatpush2.bf16.msra.mxu0 %v2897_v34  ;;  %v2950_v5 = vld [vmem:[#allocation5 + $0x6e4] ss:$16 sps:$4 sm:$0xff]   ;;  %v2948_v9 = vld [vmem:[#allocation5 + $0x6e0] ss:$16 sps:$4 sm:$0xff]  }
  0x63   :  { %1545 = vmatpush2.bf16.msra.mxu1 %v2898_v35  ;;  %1505 = vmatprep.subr.bf16.mxu0 %v2899_v36  ;;  %v2953_v10 = vld [vmem:[#allocation5 + $0x4c4] ss:$16 sps:$4 sm:$0xff]   ;;  %v2951_v12 = vld [vmem:[#allocation5 + $0x4c0] ss:$16 sps:$4 sm:$0xff]  }
  0x64   :  { %1546 = vmatprep.subr.bf16.mxu1 %v2901_v37  ;;  %v2956_v11 = vld [vmem:[#allocation5 + $0x6c4] ss:$16 sps:$4 sm:$0xff]   ;;  %v2954_v13 = vld [vmem:[#allocation5 + $0x6c0] ss:$16 sps:$4 sm:$0xff]  }
  0x65   :  { %v2959_v14 = vld [vmem:[#allocation5 + $0x4a4] ss:$16 sps:$4 sm:$0xff]   ;;  %v2957_v17 = vld [vmem:[#allocation5 + $0x4a0] ss:$16 sps:$4 sm:$0xff]  }
  0x66   :  { %1506 = vmatpush2.bf16.msra.mxu0 %v2903_v38  ;;  %v2962_v15 = vld [vmem:[#allocation5 + $0x6a4] ss:$16 sps:$4 sm:$0xff]   ;;  %v2960_v18 = vld [vmem:[#allocation5 + $0x6a0] ss:$16 sps:$4 sm:$0xff]  }
  0x67   :  { %1547 = vmatpush2.bf16.msra.mxu1 %v2904_v39  ;;  %1507 = vmatprep.subr.bf16.mxu0 %v2905_v40  ;;  %v2965_v19 = vld [vmem:[#allocation5 + $0x484] ss:$16 sps:$4 sm:$0xff]   ;;  %v2963_v21 = vld [vmem:[#allocation5 + $0x480] ss:$16 sps:$4 sm:$0xff]  }
  0x68   :  { %1548 = vmatprep.subr.bf16.mxu1 %v2907_v41  ;;  %v2968_v20 = vld [vmem:[#allocation5 + $0x684] ss:$16 sps:$4 sm:$0xff]   ;;  %v2966_v22 = vld [vmem:[#allocation5 + $0x680] ss:$16 sps:$4 sm:$0xff]  }
  0x69   :  { %v2971_v23 = vld [vmem:[#allocation5 + $0x464] ss:$16 sps:$4 sm:$0xff]   ;;  %v2969_v25 = vld [vmem:[#allocation5 + $0x460] ss:$16 sps:$4 sm:$0xff]  }
  0x6a   :  { %1508 = vmatpush2.bf16.msra.mxu0 %v2909_v42  ;;  %v2974_v24 = vld [vmem:[#allocation5 + $0x664] ss:$16 sps:$4 sm:$0xff]   ;;  %v2972_v26 = vld [vmem:[#allocation5 + $0x660] ss:$16 sps:$4 sm:$0xff]   ;;  %v2999_v42 = vld [vmem:[#allocation5 + $0xec] ss:$16 sps:$4 sm:$0xff]  }
  0x6b   :  { %1549 = vmatpush2.bf16.msra.mxu1 %v2910_v43  ;;  %1509 = vmatprep.subr.bf16.mxu0 %v2911_v44  ;;  %v2977_v27 = vld [vmem:[#allocation5 + $0x444] ss:$16 sps:$4 sm:$0xff]   ;;  %v2975_v29 = vld [vmem:[#allocation5 + $0x440] ss:$16 sps:$4 sm:$0xff]   ;;  %v3516_v44 = vld [vmem:[#allocation2 + $0x18] ss:$0 sps:$4 sm:$0xff]  }
  0x6c   :  { %1550 = vmatprep.subr.bf16.mxu1 %v2913_v45  ;;  %v2980_v28 = vld [vmem:[#allocation5 + $0x644] ss:$16 sps:$4 sm:$0xff]   ;;  %v2978_v30 = vld [vmem:[#allocation5 + $0x640] ss:$16 sps:$4 sm:$0xff]   ;;  %v2997_v45 = vld [vmem:[#allocation5 + $0xe8] ss:$16 sps:$4 sm:$0xff]  }
  0x6d   :  { %v2983_v31 = vld [vmem:[#allocation5 + $0x424] ss:$16 sps:$4 sm:$0xff]   ;;  %v2981_v34 = vld [vmem:[#allocation5 + $0x420] ss:$16 sps:$4 sm:$0xff]  }
  0x6e   :  { %1510 = vmatpush2.bf16.msra.mxu0 %v2915_v49  ;;  %v2986_v32 = vld [vmem:[#allocation5 + $0x624] ss:$16 sps:$4 sm:$0xff]   ;;  %v2984_v36 = vld [vmem:[#allocation5 + $0x620] ss:$16 sps:$4 sm:$0xff]  }
  0x6f   :  { %1551 = vmatpush2.bf16.msra.mxu1 %v2916_v50  ;;  %1511 = vmatprep.subr.bf16.mxu0 %v2917_v52  ;;  %v3509_v33 = vld [vmem:[#allocation2 + $0x10] sm:$0xff]  ;;  %v2987_v39 = vld [vmem:[#allocation5 + $0x400] ss:$16 sps:$4 sm:$0xff]  }
  0x70   :  { %1552 = vmatprep.subr.bf16.mxu1 %v2919_v53  ;;  %v3513_v35 = vcombine.high %v3509_v33, %v3509_v33  ;;  %v2989_v37 = vld [vmem:[#allocation5 + $0x404] ss:$16 sps:$4 sm:$0xff]   ;;  %v2990_v40 = vld [vmem:[#allocation5 + $0x600] ss:$16 sps:$4 sm:$0xff]   ;;  %v3003_v50 = vld [vmem:[#allocation5 + $0xc8] ss:$16 sps:$4 sm:$0xff]  }
  0x71   :  { %v2992_v38 = vld [vmem:[#allocation5 + $0x604] ss:$16 sps:$4 sm:$0xff]   ;;  %v2993_v43 = vld [vmem:[#allocation5 + $0x5e0] ss:$16 sps:$4 sm:$0xff]   ;;  %v3011_v53 = vld [vmem:[#allocation5 + $0xac] ss:$16 sps:$4 sm:$0xff]  }
  0x72   :  { %1512 = vmatpush2.bf16.msra.mxu0 %v2921_v54  ;;  %v2995_v41 = vld [vmem:[#allocation5 + $0x5e4] ss:$16 sps:$4 sm:$0xff]   ;;  %v3000_v49 = vld [vmem:[#allocation5 + $0x5c0] ss:$16 sps:$4 sm:$0xff]  }
  0x73   :  { %1553 = vmatpush2.bf16.msra.mxu1 %v2922_v55  ;;  %1513 = vmatprep.subr.bf16.mxu0 %v2923_v56  ;;  %v3002_v46 = vld [vmem:[#allocation5 + $0x5c4] ss:$16 sps:$4 sm:$0xff]   ;;  %v3006_v54 = vld [vmem:[#allocation5 + $0x5a0] ss:$16 sps:$4 sm:$0xff]   ;;  %v3009_v55 = vld [vmem:[#allocation5 + $0xa8] ss:$16 sps:$4 sm:$0xff]  }
  0x74   :  { %1554 = vmatprep.subr.bf16.mxu1 %v2925_v57  ;;  %v3008_v52 = vld [vmem:[#allocation5 + $0x5a4] ss:$16 sps:$4 sm:$0xff]   ;;  %v3017_v57 = vld [vmem:[#allocation5 + $0x8c] ss:$16 sps:$4 sm:$0xff]  }
  0x75   :  { %v3014_v56 = vld [vmem:[#allocation5 + $0x584] ss:$16 sps:$4 sm:$0xff]  }
  0x76   :  { %1514 = vmatpush2.bf16.msra.mxu0 %v2927_v58  ;;  %v3012_v58 = vld [vmem:[#allocation5 + $0x580] ss:$16 sps:$4 sm:$0xff]  }
  0x77   :  { %1555 = vmatpush2.bf16.msra.mxu1 %v2928_v59  ;;  %1515 = vmatprep.subr.bf16.mxu0 %v2929_v60  ;;  %v3015_v59 = vld [vmem:[#allocation5 + $0x88] ss:$16 sps:$4 sm:$0xff]   ;;  %v3020_v60 = vld [vmem:[#allocation5 + $0x564] ss:$16 sps:$4 sm:$0xff]  }
  0x78   :  { %1556 = vmatprep.subr.bf16.mxu1 %v2931_v61  ;;  %v3023_v61 = vld [vmem:[#allocation5 + $0x6c] ss:$16 sps:$4 sm:$0xff]  }
  0x7a   :  { %1516 = vmatpush2.bf16.msra.mxu0 %v2933_v62  ;;  %v3018_v62 = vld [vmem:[#allocation5 + $0x560] ss:$16 sps:$4 sm:$0xff]  }
  0x7b   :  { %1557 = vmatpush2.bf16.msra.mxu1 %v2934_v63  ;;  %1517 = vmatprep.subr.bf16.mxu0 %v2935_v0  ;;  %v3026_v63 = vld [vmem:[#allocation5 + $0x544] ss:$16 sps:$4 sm:$0xff]   ;;  %v3029_v0 = vld [vmem:[#allocation5 + $0x4c] ss:$16 sps:$4 sm:$0xff]  }
  0x7c   :  { %1558 = vmatprep.subr.bf16.mxu1 %v2937_v1  ;;  %v3024_v1 = vld [vmem:[#allocation5 + $0x540] ss:$16 sps:$4 sm:$0xff]  }
  0x7e   :  { %1518 = vmatpush2.bf16.msra.mxu0 %v2939_v2  ;;  %v3027_v2 = vld [vmem:[#allocation5 + $0x48] ss:$16 sps:$4 sm:$0xff]  }
  0x7f   :  { %1559 = vmatpush2.bf16.msra.mxu1 %v2940_v3  ;;  %1569 = vmatprep.subr.bf16.mxu0 %v2947_v4  ;;  %v3032_v3 = vld [vmem:[#allocation5 + $0x524] ss:$16 sps:$4 sm:$0xff]   ;;  %v3035_v4 = vld [vmem:[#allocation5 + $0x2c] ss:$16 sps:$4 sm:$0xff]  }
  0x80   :  { %1610 = vmatprep.subr.bf16.mxu1 %v2950_v5  ;;  %v3030_v5 = vld [vmem:[#allocation5 + $0x520] ss:$16 sps:$4 sm:$0xff]  }
  0x81   :  { %1520 = vmatmul.mubr.bf16.vlgmr.msra.gmra.mxu0 %v3502_v6 }
  0x82   :  { %1561 = vmatmul.mubr.bf16.vlgmr.msra.gmra.mxu1 %v3504_v7  ;;  %1570 = vmatpush1.bf16.msra.mxu0 %v2945_v8  ;;  %v3033_v8 = vld [vmem:[#allocation5 + $0x28] ss:$16 sps:$4 sm:$0xff]  }
  0x83   :  { %1611 = vmatpush1.bf16.msra.mxu1 %v2948_v9  ;;  %1571 = vmatprep.subr.bf16.mxu0 %v2953_v10  ;;  %v3038_v9 = vld [vmem:[#allocation5 + $0x504] ss:$16 sps:$4 sm:$0xff]   ;;  %v3041_v10 = vld [vmem:[#allocation5 + $0xc] ss:$16 sps:$4 sm:$0xff]  }
  0x84   :  { %1612 = vmatprep.subr.bf16.mxu1 %v2956_v11  ;;  %1642 = vmatprep.mubr.bf16.mxu1 %v3439_v16  ;;  %v3036_v11 = vld [vmem:[#allocation5 + $0x500] ss:$16 sps:$4 sm:$0xff]  }
  0x85   :  { %1601 = vmatprep.mubr.bf16.mxu0 %v3513_v35 }
  0x86   :  { %1572 = vmatpush1.bf16.msra.mxu0 %v2951_v12  ;;  %v3039_v12 = vld [vmem:[#allocation5 + $0x8] ss:$16 sps:$4 sm:$0xff]  }
  0x87   :  { %1613 = vmatpush1.bf16.msra.mxu1 %v2954_v13  ;;  %1573 = vmatprep.subr.bf16.mxu0 %v2959_v14  ;;  %v3046_v13 = vld [vmem:[#allocation5 + $0x1ec] ss:$16 sps:$4 sm:$0xff]  }
  0x88   :  { %1614 = vmatprep.subr.bf16.mxu1 %v2962_v15  ;;  %v3049_v14 = vld [vmem:[#allocation5 + $0x2ec] ss:$16 sps:$4 sm:$0xff]   ;;  %v3522_v15 = vcombine.low %v3509_v33, %v3509_v33  ;;  %v3068_v33 = vld [vmem:[#allocation5 + $0x168] ss:$16 sps:$4 sm:$0xff]  }
  0x8a   :  { %1574 = vmatpush1.bf16.msra.mxu0 %v2957_v17  ;;  %v3044_v17 = vld [vmem:[#allocation5 + $0x1e8] ss:$16 sps:$4 sm:$0xff]  }
  0x8b   :  { %1615 = vmatpush1.bf16.msra.mxu1 %v2960_v18  ;;  %1575 = vmatprep.subr.bf16.mxu0 %v2965_v19  ;;  %v3047_v18 = vld [vmem:[#allocation5 + $0x2e8] ss:$16 sps:$4 sm:$0xff]   ;;  %v3052_v19 = vld [vmem:[#allocation5 + $0x1cc] ss:$16 sps:$4 sm:$0xff]  }
  0x8c   :  { %1616 = vmatprep.subr.bf16.mxu1 %v2968_v20  ;;  %v3055_v20 = vld [vmem:[#allocation5 + $0x2cc] ss:$16 sps:$4 sm:$0xff]  }
  0x8e   :  { %1576 = vmatpush1.bf16.msra.mxu0 %v2963_v21  ;;  %v3050_v21 = vld [vmem:[#allocation5 + $0x1c8] ss:$16 sps:$4 sm:$0xff]  }
  0x8f   :  { %1617 = vmatpush1.bf16.msra.mxu1 %v2966_v22  ;;  %1577 = vmatprep.subr.bf16.mxu0 %v2971_v23  ;;  %v3053_v22 = vld [vmem:[#allocation5 + $0x2c8] ss:$16 sps:$4 sm:$0xff]   ;;  %v3058_v23 = vld [vmem:[#allocation5 + $0x1ac] ss:$16 sps:$4 sm:$0xff]  }
  0x90   :  { %1618 = vmatprep.subr.bf16.mxu1 %v2974_v24  ;;  %v3061_v24 = vld [vmem:[#allocation5 + $0x2ac] ss:$16 sps:$4 sm:$0xff]  }
  0x92   :  { %1578 = vmatpush1.bf16.msra.mxu0 %v2969_v25  ;;  %v3056_v25 = vld [vmem:[#allocation5 + $0x1a8] ss:$16 sps:$4 sm:$0xff]  }
  0x93   :  { %1619 = vmatpush1.bf16.msra.mxu1 %v2972_v26  ;;  %1579 = vmatprep.subr.bf16.mxu0 %v2977_v27  ;;  %v3059_v26 = vld [vmem:[#allocation5 + $0x2a8] ss:$16 sps:$4 sm:$0xff]   ;;  %v3064_v27 = vld [vmem:[#allocation5 + $0x18c] ss:$16 sps:$4 sm:$0xff]  }
  0x94   :  { %1620 = vmatprep.subr.bf16.mxu1 %v2980_v28  ;;  %v3067_v28 = vld [vmem:[#allocation5 + $0x28c] ss:$16 sps:$4 sm:$0xff]  }
  0x96   :  { %1580 = vmatpush1.bf16.msra.mxu0 %v2975_v29  ;;  %v3062_v29 = vld [vmem:[#allocation5 + $0x188] ss:$16 sps:$4 sm:$0xff]  }
  0x97   :  { %1621 = vmatpush1.bf16.msra.mxu1 %v2978_v30  ;;  %1581 = vmatprep.subr.bf16.mxu0 %v2983_v31  ;;  %v3065_v30 = vld [vmem:[#allocation5 + $0x288] ss:$16 sps:$4 sm:$0xff]   ;;  %v3070_v31 = vld [vmem:[#allocation5 + $0x16c] ss:$16 sps:$4 sm:$0xff]  }
  0x98   :  { %1622 = vmatprep.subr.bf16.mxu1 %v2986_v32  ;;  %v3073_v32 = vld [vmem:[#allocation5 + $0x26c] ss:$16 sps:$4 sm:$0xff]  }
  0x9a   :  { %1582 = vmatpush1.bf16.msra.mxu0 %v2981_v34  ;;  %v3076_v34 = vld [vmem:[#allocation5 + $0x14c] ss:$16 sps:$4 sm:$0xff]  }
  0x9b   :  { %1623 = vmatpush1.bf16.msra.mxu1 %v2984_v36  ;;  %1583 = vmatprep.subr.bf16.mxu0 %v2989_v37  ;;  %v3079_v36 = vld [vmem:[#allocation5 + $0x24c] ss:$16 sps:$4 sm:$0xff]   ;;  %v3074_v37 = vld [vmem:[#allocation5 + $0x148] ss:$16 sps:$4 sm:$0xff]  }
  0x9c   :  { %1624 = vmatprep.subr.bf16.mxu1 %v2992_v38  ;;  %v3077_v38 = vld [vmem:[#allocation5 + $0x248] ss:$16 sps:$4 sm:$0xff]  }
  0x9e   :  { %1584 = vmatpush1.bf16.msra.mxu0 %v2987_v39  ;;  %v3082_v39 = vld [vmem:[#allocation5 + $0x12c] ss:$16 sps:$4 sm:$0xff]  }
  0x9f   :  { %1625 = vmatpush1.bf16.msra.mxu1 %v2990_v40  ;;  %1585 = vmatprep.subr.bf16.mxu0 %v2995_v41  ;;  %v3085_v40 = vld [vmem:[#allocation5 + $0x22c] ss:$16 sps:$4 sm:$0xff]   ;;  %v3080_v41 = vld [vmem:[#allocation5 + $0x128] ss:$16 sps:$4 sm:$0xff]  }
  0xa0   :  { %1651 = vmatprep.subr.bf16.mxu1 %v2999_v42  ;;  %v3083_v42 = vld [vmem:[#allocation5 + $0x228] ss:$16 sps:$4 sm:$0xff]  }
  0xa2   :  { %1643 = vmatmul.mubr.bf16.vlgmr.msra.gmra.mxu1 %v3516_v44  ;;  %1586 = vmatpush2.bf16.msra.mxu0 %v2993_v43  ;;  %v3088_v43 = vld [vmem:[#allocation5 + $0x10c] ss:$16 sps:$4 sm:$0xff]  }
  0xa3   :  { %1652 = vmatpush1.bf16.msra.mxu1 %v2997_v45  ;;  %1587 = vmatprep.subr.bf16.mxu0 %v3002_v46  ;;  %v3091_v45 = vld [vmem:[#allocation5 + $0x20c] ss:$16 sps:$4 sm:$0xff]   ;;  %v3086_v46 = vld [vmem:[#allocation5 + $0x108] ss:$16 sps:$4 sm:$0xff]  }
  0xa4   :  { %1653 = vmatprep.subr.bf16.mxu1 %v3005_v48  ;;  %1683 = vmatprep.mubr.bf16.mxu1 %v3496_v47  ;;  %v3021_v47 = vld [vmem:[#allocation5 + $0x68] ss:$16 sps:$4 sm:$0xff]  }
  0xa5   :  { %v3089_v48 = vld [vmem:[#allocation5 + $0x208] ss:$16 sps:$4 sm:$0xff]  }
  0xa6   :  { %1588 = vmatpush2.bf16.msra.mxu0 %v3000_v49  ;;  %v3094_v49 = vld [vmem:[#allocation5 + $0x3ec] ss:$16 sps:$4 sm:$0xff]  }
  0xa7   :  { %1654 = vmatpush1.bf16.msra.mxu1 %v3003_v50  ;;  %1589 = vmatprep.subr.bf16.mxu0 %v3008_v52  ;;  %v3097_v50 = vld [vmem:[#allocation5 + $0x4ec] ss:$16 sps:$4 sm:$0xff]   ;;  %v3092_v52 = vld [vmem:[#allocation5 + $0x3e8] ss:$16 sps:$4 sm:$0xff]  }
  0xa8   :  { %1655 = vmatprep.subr.bf16.mxu1 %v3011_v53  ;;  %v3095_v53 = vld [vmem:[#allocation5 + $0x4e8] ss:$16 sps:$4 sm:$0xff]  }
  0xaa   :  { %1590 = vmatpush2.bf16.msra.mxu0 %v3006_v54  ;;  %v3100_v54 = vld [vmem:[#allocation5 + $0x3cc] ss:$16 sps:$4 sm:$0xff]  }
  0xab   :  { %1656 = vmatpush1.bf16.msra.mxu1 %v3009_v55  ;;  %1591 = vmatprep.subr.bf16.mxu0 %v3014_v56  ;;  %v3103_v55 = vld [vmem:[#allocation5 + $0x4cc] ss:$16 sps:$4 sm:$0xff]   ;;  %v3098_v56 = vld [vmem:[#allocation5 + $0x3c8] ss:$16 sps:$4 sm:$0xff]  }
  0xac   :  { %1657 = vmatprep.subr.bf16.mxu1 %v3017_v57  ;;  %v3101_v57 = vld [vmem:[#allocation5 + $0x4c8] ss:$16 sps:$4 sm:$0xff]  }
  0xae   :  { %1592 = vmatpush2.bf16.msra.mxu0 %v3012_v58  ;;  %v3106_v58 = vld [vmem:[#allocation5 + $0x3ac] ss:$16 sps:$4 sm:$0xff]  }
  0xaf   :  { %1658 = vmatpush1.bf16.msra.mxu1 %v3015_v59  ;;  %1593 = vmatprep.subr.bf16.mxu0 %v3020_v60  ;;  %v3109_v59 = vld [vmem:[#allocation5 + $0x4ac] ss:$16 sps:$4 sm:$0xff]   ;;  %v3104_v60 = vld [vmem:[#allocation5 + $0x3a8] ss:$16 sps:$4 sm:$0xff]  }
  0xb0   :  { %1659 = vmatprep.subr.bf16.mxu1 %v3023_v61  ;;  %v3107_v61 = vld [vmem:[#allocation5 + $0x4a8] ss:$16 sps:$4 sm:$0xff]  }
  0xb2   :  { %1594 = vmatpush2.bf16.msra.mxu0 %v3018_v62  ;;  %v3112_v62 = vld [vmem:[#allocation5 + $0x38c] ss:$16 sps:$4 sm:$0xff]  }
  0xb3   :  { %1660 = vmatpush1.bf16.msra.mxu1 %v3021_v47  ;;  %1595 = vmatprep.subr.bf16.mxu0 %v3026_v63  ;;  %v3115_v47 = vld [vmem:[#allocation5 + $0x48c] ss:$16 sps:$4 sm:$0xff]   ;;  %v3110_v63 = vld [vmem:[#allocation5 + $0x388] ss:$16 sps:$4 sm:$0xff]  }
  0xb4   :  { %1661 = vmatprep.subr.bf16.mxu1 %v3029_v0  ;;  %v3118_v0 = vld [vmem:[#allocation5 + $0x36c] ss:$16 sps:$4 sm:$0xff]  }
  0xb6   :  { %1596 = vmatpush2.bf16.msra.mxu0 %v3024_v1  ;;  %v3121_v1 = vld [vmem:[#allocation5 + $0x46c] ss:$16 sps:$4 sm:$0xff]  }
  0xb7   :  { %1662 = vmatpush1.bf16.msra.mxu1 %v3027_v2  ;;  %1597 = vmatprep.subr.bf16.mxu0 %v3032_v3  ;;  %v3116_v2 = vld [vmem:[#allocation5 + $0x368] ss:$16 sps:$4 sm:$0xff]  }
  0xb8   :  { %1663 = vmatprep.subr.bf16.mxu1 %v3035_v4  ;;  %v3119_v3 = vld [vmem:[#allocation5 + $0x468] ss:$16 sps:$4 sm:$0xff]   ;;  %v3124_v4 = vld [vmem:[#allocation5 + $0x34c] ss:$16 sps:$4 sm:$0xff]  }
  0xba   :  { %1598 = vmatpush2.bf16.msra.mxu0 %v3030_v5  ;;  %v3127_v5 = vld [vmem:[#allocation5 + $0x44c] ss:$16 sps:$4 sm:$0xff]  }
  0xbb   :  { %1664 = vmatpush1.bf16.msra.mxu1 %v3033_v8  ;;  %1599 = vmatprep.subr.bf16.mxu0 %v3038_v9  ;;  %v3125_v8 = vld [vmem:[#allocation5 + $0x448] ss:$16 sps:$4 sm:$0xff]   ;;  %v3130_v9 = vld [vmem:[#allocation5 + $0x32c] ss:$16 sps:$4 sm:$0xff]  }
  0xbc   :  { %1665 = vmatprep.subr.bf16.mxu1 %v3041_v10  ;;  %v3133_v10 = vld [vmem:[#allocation5 + $0x42c] ss:$16 sps:$4 sm:$0xff]  }
  0xbe   :  { %1600 = vmatpush2.bf16.msra.mxu0 %v3036_v11  ;;  %v3128_v11 = vld [vmem:[#allocation5 + $0x328] ss:$16 sps:$4 sm:$0xff]  }
  0xbf   :  { %1666 = vmatpush1.bf16.msra.mxu1 %v3039_v12  ;;  %1692 = vmatprep.subr.bf16.mxu0 %v3049_v14  ;;  %v3131_v12 = vld [vmem:[#allocation5 + $0x428] ss:$16 sps:$4 sm:$0xff]   ;;  %v3139_v14 = vld [vmem:[#allocation5 + $0x40c] ss:$16 sps:$4 sm:$0xff]  }
  0xc0   :  { %1667 = vmatprep.subr.bf16.mxu1 %v3046_v13  ;;  %v3136_v13 = vld [vmem:[#allocation5 + $0x30c] ss:$16 sps:$4 sm:$0xff]  }
  0xc1   :  { %1602 = vmatmul.mubr.bf16.vlgmr.msra.gmra.mxu0 %v3522_v15 }
  0xc2   :  { %1693 = vmatpush1.bf16.msra.mxu0 %v3047_v18  ;;  %1724 = vmatprep.mubr.bf16.mxu0 %v3498_v51  ;;  %v3071_v51 = vld [vmem:[#allocation5 + $0x268] ss:$16 sps:$4 sm:$0xff]  }
  0xc3   :  { %1668 = vmatpush2.bf16.msra.mxu1 %v3044_v17  ;;  %1694 = vmatprep.subr.bf16.mxu0 %v3055_v20  ;;  %v3134_v17 = vld [vmem:[#allocation5 + $0x308] ss:$16 sps:$4 sm:$0xff]   ;;  %v3145_v20 = vld [vmem:[#allocation5 + $0x6ec] ss:$16 sps:$4 sm:$0xff]  }
  0xc4   :  { %1669 = vmatprep.subr.bf16.mxu1 %v3052_v19  ;;  %v3137_v18 = vld [vmem:[#allocation5 + $0x408] ss:$16 sps:$4 sm:$0xff]   ;;  %v3142_v19 = vld [vmem:[#allocation5 + $0x5ec] ss:$16 sps:$4 sm:$0xff]  }
  0xc6   :  { %1695 = vmatpush1.bf16.msra.mxu0 %v3053_v22  ;;  %v3143_v22 = vld [vmem:[#allocation5 + $0x6e8] ss:$16 sps:$4 sm:$0xff]  }
  0xc7   :  { %1670 = vmatpush2.bf16.msra.mxu1 %v3050_v21  ;;  %1696 = vmatprep.subr.bf16.mxu0 %v3061_v24  ;;  %v3140_v21 = vld [vmem:[#allocation5 + $0x5e8] ss:$16 sps:$4 sm:$0xff]   ;;  %v3151_v24 = vld [vmem:[#allocation5 + $0x6cc] ss:$16 sps:$4 sm:$0xff]  }
  0xc8   :  { %1671 = vmatprep.subr.bf16.mxu1 %v3058_v23  ;;  %v3148_v23 = vld [vmem:[#allocation5 + $0x5cc] ss:$16 sps:$4 sm:$0xff]  }
  0xca   :  { %1697 = vmatpush1.bf16.msra.mxu0 %v3059_v26  ;;  %v3149_v26 = vld [vmem:[#allocation5 + $0x6c8] ss:$16 sps:$4 sm:$0xff]  }
  0xcb   :  { %1672 = vmatpush2.bf16.msra.mxu1 %v3056_v25  ;;  %1698 = vmatprep.subr.bf16.mxu0 %v3067_v28  ;;  %v3146_v25 = vld [vmem:[#allocation5 + $0x5c8] ss:$16 sps:$4 sm:$0xff]   ;;  %v3157_v28 = vld [vmem:[#allocation5 + $0x6ac] ss:$16 sps:$4 sm:$0xff]  }
  0xcc   :  { %1673 = vmatprep.subr.bf16.mxu1 %v3064_v27  ;;  %v3154_v27 = vld [vmem:[#allocation5 + $0x5ac] ss:$16 sps:$4 sm:$0xff]  }
  0xce   :  { %1699 = vmatpush1.bf16.msra.mxu0 %v3065_v30  ;;  %v3155_v30 = vld [vmem:[#allocation5 + $0x6a8] ss:$16 sps:$4 sm:$0xff]  }
  0xcf   :  { %1674 = vmatpush2.bf16.msra.mxu1 %v3062_v29  ;;  %1700 = vmatprep.subr.bf16.mxu0 %v3073_v32  ;;  %v3152_v29 = vld [vmem:[#allocation5 + $0x5a8] ss:$16 sps:$4 sm:$0xff]   ;;  %v3163_v32 = vld [vmem:[#allocation5 + $0x68c] ss:$16 sps:$4 sm:$0xff]  }
  0xd0   :  { %1675 = vmatprep.subr.bf16.mxu1 %v3070_v31  ;;  %v3160_v31 = vld [vmem:[#allocation5 + $0x58c] ss:$16 sps:$4 sm:$0xff]  }
  0xd2   :  { %1701 = vmatpush1.bf16.msra.mxu0 %v3071_v51  ;;  %v3166_v51 = vld [vmem:[#allocation5 + $0x56c] ss:$16 sps:$4 sm:$0xff]  }
  0xd3   :  { %1676 = vmatpush2.bf16.msra.mxu1 %v3068_v33  ;;  %1702 = vmatprep.subr.bf16.mxu0 %v3079_v36  ;;  %v3161_v33 = vld [vmem:[#allocation5 + $0x688] ss:$16 sps:$4 sm:$0xff]  }
  0xd4   :  { %1677 = vmatprep.subr.bf16.mxu1 %v3076_v34  ;;  %v3169_v34 = vld [vmem:[#allocation5 + $0x66c] ss:$16 sps:$4 sm:$0xff]   ;;  %v3164_v36 = vld [vmem:[#allocation5 + $0x568] ss:$16 sps:$4 sm:$0xff]  }
  0xd6   :  { %1703 = vmatpush1.bf16.msra.mxu0 %v3077_v38  ;;  %v3175_v38 = vld [vmem:[#allocation5 + $0x64c] ss:$16 sps:$4 sm:$0xff]  }
  0xd7   :  { %1678 = vmatpush2.bf16.msra.mxu1 %v3074_v37  ;;  %1704 = vmatprep.subr.bf16.mxu0 %v3085_v40  ;;  %v3172_v37 = vld [vmem:[#allocation5 + $0x54c] ss:$16 sps:$4 sm:$0xff]   ;;  %v3173_v40 = vld [vmem:[#allocation5 + $0x648] ss:$16 sps:$4 sm:$0xff]  }
  0xd8   :  { %1679 = vmatprep.subr.bf16.mxu1 %v3082_v39  ;;  %v3170_v39 = vld [vmem:[#allocation5 + $0x548] ss:$16 sps:$4 sm:$0xff]  }
  0xda   :  { %1705 = vmatpush1.bf16.msra.mxu0 %v3083_v42  ;;  %v3181_v42 = vld [vmem:[#allocation5 + $0x62c] ss:$16 sps:$4 sm:$0xff]  }
  0xdb   :  { %1680 = vmatpush2.bf16.msra.mxu1 %v3080_v41  ;;  %1706 = vmatprep.subr.bf16.mxu0 %v3091_v45  ;;  %v3178_v41 = vld [vmem:[#allocation5 + $0x52c] ss:$16 sps:$4 sm:$0xff]   ;;  %v3179_v45 = vld [vmem:[#allocation5 + $0x628] ss:$16 sps:$4 sm:$0xff]  }
  0xdc   :  { %1681 = vmatprep.subr.bf16.mxu1 %v3088_v43  ;;  %v3176_v43 = vld [vmem:[#allocation5 + $0x528] ss:$16 sps:$4 sm:$0xff]  }
  0xde   :  { %1707 = vmatpush1.bf16.msra.mxu0 %v3089_v48  ;;  %v3187_v48 = vld [vmem:[#allocation5 + $0x60c] ss:$16 sps:$4 sm:$0xff]  }
  0xdf   :  { %1682 = vmatpush2.bf16.msra.mxu1 %v3086_v46  ;;  %1708 = vmatprep.subr.bf16.mxu0 %v3094_v49  ;;  %v3184_v46 = vld [vmem:[#allocation5 + $0x50c] ss:$16 sps:$4 sm:$0xff]   ;;  %v3182_v49 = vld [vmem:[#allocation5 + $0x508] ss:$16 sps:$4 sm:$0xff]  }
  0xe0   :  { %1733 = vmatprep.subr.bf16.mxu1 %v3097_v50  ;;  %v3185_v50 = vld [vmem:[#allocation5 + $0x608] ss:$16 sps:$4 sm:$0xff]  }
  0xe2   :  { %1684 = vmatmul.mubr.bf16.vlgmr.msra.gmra.mxu1 %v3502_v6  ;;  %1709 = vmatpush2.bf16.msra.mxu0 %v3092_v52  ;;  %v3113_v6 = vld [vmem:[#allocation5 + $0x488] ss:$16 sps:$4 sm:$0xff]  }
  0xe3   :  { %1734 = vmatpush1.bf16.msra.mxu1 %v3095_v53  ;;  %1710 = vmatprep.subr.bf16.mxu0 %v3100_v54  ;;  %v3190_v52 = vld [vmem:[#allocation8 + $0x74] ss:$8 sps:$4 sm:$0xff]   ;;  %v3188_v53 = vld [vmem:[#allocation8 + $0x70] ss:$8 sps:$4 sm:$0xff]   ;;  %v3193_v54 = vld [vmem:[#allocation8 + $0x64] ss:$8 sps:$4 sm:$0xff]  }
  0xe4   :  { %1735 = vmatprep.subr.bf16.mxu1 %v3103_v55  ;;  %1765 = vmatprep.mubr.bf16.mxu1 %v3513_v35  ;;  %v3122_v35 = vld [vmem:[#allocation5 + $0x348] ss:$16 sps:$4 sm:$0xff]   ;;  %v3191_v55 = vld [vmem:[#allocation8 + $0x60] ss:$8 sps:$4 sm:$0xff]  }
  0xe6   :  { %1711 = vmatpush2.bf16.msra.mxu0 %v3098_v56  ;;  %v3196_v56 = vld [vmem:[#allocation8 + $0x54] ss:$8 sps:$4 sm:$0xff]  }
  0xe7   :  { %1736 = vmatpush1.bf16.msra.mxu1 %v3101_v57  ;;  %1712 = vmatprep.subr.bf16.mxu0 %v3106_v58  ;;  %v3194_v57 = vld [vmem:[#allocation8 + $0x50] ss:$8 sps:$4 sm:$0xff]   ;;  %v3199_v58 = vld [vmem:[#allocation8 + $0x44] ss:$8 sps:$4 sm:$0xff]  }
  0xe8   :  { %1737 = vmatprep.subr.bf16.mxu1 %v3109_v59  ;;  %v3236_v59 = vld [vmem:[#allocation8 + $0x170] ss:$8 sps:$4 sm:$0xff]  }
  0xea   :  { %1713 = vmatpush2.bf16.msra.mxu0 %v3104_v60  ;;  %v3238_v60 = vld [vmem:[#allocation8 + $0x174] ss:$8 sps:$4 sm:$0xff]  }
  0xeb   :  { %1738 = vmatpush1.bf16.msra.mxu1 %v3107_v61  ;;  %1714 = vmatprep.subr.bf16.mxu0 %v3112_v62  ;;  %v3241_v61 = vld [vmem:[#allocation8 + $0x164] ss:$8 sps:$4 sm:$0xff]   ;;  %v3197_v62 = vld [vmem:[#allocation8 + $0x40] ss:$8 sps:$4 sm:$0xff]  }
  0xec   :  { %1739 = vmatprep.subr.bf16.mxu1 %v3115_v47  ;;  %v3239_v47 = vld [vmem:[#allocation8 + $0x160] ss:$8 sps:$4 sm:$0xff]  }
  0xee   :  { %1715 = vmatpush2.bf16.msra.mxu0 %v3110_v63  ;;  %v3200_v63 = vld [vmem:[#allocation8 + $0x30] ss:$8 sps:$4 sm:$0xff]  }
  0xef   :  { %1740 = vmatpush1.bf16.msra.mxu1 %v3113_v6  ;;  %1716 = vmatprep.subr.bf16.mxu0 %v3118_v0  ;;  %v3242_v6 = vld [vmem:[#allocation8 + $0x150] ss:$8 sps:$4 sm:$0xff]   ;;  %v3205_v0 = vld [vmem:[#allocation8 + $0x24] ss:$8 sps:$4 sm:$0xff]  }
  0xf0   :  { %1741 = vmatprep.subr.bf16.mxu1 %v3121_v1  ;;  %v3247_v1 = vld [vmem:[#allocation8 + $0x144] ss:$8 sps:$4 sm:$0xff]  }
  0xf2   :  { %1717 = vmatpush2.bf16.msra.mxu0 %v3116_v2  ;;  %v3203_v2 = vld [vmem:[#allocation8 + $0x20] ss:$8 sps:$4 sm:$0xff]  }
  0xf3   :  { %1742 = vmatpush1.bf16.msra.mxu1 %v3119_v3  ;;  %1718 = vmatprep.subr.bf16.mxu0 %v3124_v4  ;;  %v3245_v3 = vld [vmem:[#allocation8 + $0x140] ss:$8 sps:$4 sm:$0xff]   ;;  %v3208_v4 = vld [vmem:[#allocation8 + $0x14] ss:$8 sps:$4 sm:$0xff]  }
  0xf4   :  { %1743 = vmatprep.subr.bf16.mxu1 %v3127_v5  ;;  %v3250_v5 = vld [vmem:[#allocation8 + $0x134] ss:$8 sps:$4 sm:$0xff]  }
  0xf6   :  { %1719 = vmatpush2.bf16.msra.mxu0 %v3122_v35  ;;  %v3206_v35 = vld [vmem:[#allocation8 + $0x10] ss:$8 sps:$4 sm:$0xff]  }
  0xf7   :  { %1744 = vmatpush1.bf16.msra.mxu1 %v3125_v8  ;;  %1720 = vmatprep.subr.bf16.mxu0 %v3130_v9  ;;  %v3248_v8 = vld [vmem:[#allocation8 + $0x130] ss:$8 sps:$4 sm:$0xff]   ;;  %v3211_v9 = vld [vmem:[#allocation8 + $0x4] ss:$8 sps:$4 sm:$0xff]  }
  0xf8   :  { %1745 = vmatprep.subr.bf16.mxu1 %v3133_v10  ;;  %v3209_v10 = vld [vmem:[#allocation8] ss:$8 sps:$4 sm:$0xff]  }
  0xfa   :  { %1721 = vmatpush2.bf16.msra.mxu0 %v3128_v11  ;;  %v3214_v11 = vld [vmem:[#allocation8 + $0xf4] ss:$8 sps:$4 sm:$0xff]  }
  0xfb   :  { %1746 = vmatpush1.bf16.msra.mxu1 %v3131_v12  ;;  %1722 = vmatprep.subr.bf16.mxu0 %v3136_v13  ;;  %v3212_v12 = vld [vmem:[#allocation8 + $0xf0] ss:$8 sps:$4 sm:$0xff]   ;;  %v3217_v13 = vld [vmem:[#allocation8 + $0xe4] ss:$8 sps:$4 sm:$0xff]  }
  0xfc   :  { %1747 = vmatprep.subr.bf16.mxu1 %v3139_v14  ;;  %v3253_v14 = vld [vmem:[#allocation8 + $0x124] ss:$8 sps:$4 sm:$0xff]  }
  0xfe   :  { %1723 = vmatpush2.bf16.msra.mxu0 %v3134_v17  ;;  %v3251_v17 = vld [vmem:[#allocation8 + $0x120] ss:$8 sps:$4 sm:$0xff]  }
  0xff   :  { %1748 = vmatpush1.bf16.msra.mxu1 %v3137_v18  ;;  %1774 = vmatprep.subr.bf16.mxu0 %v3145_v20  ;;  %v3215_v20 = vld [vmem:[#allocation8 + $0xe0] ss:$8 sps:$4 sm:$0xff]  }
 0x100   :  { %1749 = vmatprep.subr.bf16.mxu1 %v3142_v19 }
 0x101   :  { %1725 = vmatmul.mubr.bf16.vlgmr.msra.gmra.mxu0 %v3504_v7  ;;  %v3158_v7 = vld [vmem:[#allocation5 + $0x588] ss:$16 sps:$4 sm:$0xff]  }
 0x102   :  { %1775 = vmatpush1.bf16.msra.mxu0 %v3143_v22  ;;  %1806 = vmatprep.mubr.bf16.mxu0 %v3439_v16  ;;  %v3167_v16 = vld [vmem:[#allocation5 + $0x668] ss:$16 sps:$4 sm:$0xff]  }
 0x103   :  { %1750 = vmatpush2.bf16.msra.mxu1 %v3140_v21  ;;  %1776 = vmatprep.subr.bf16.mxu0 %v3151_v24  ;;  %v3256_v24 = vld [vmem:[#allocation8 + $0x114] ss:$8 sps:$4 sm:$0xff]  }
 0x104   :  { %1751 = vmatprep.subr.bf16.mxu1 %v3148_v23  ;;  %v3220_v23 = vld [vmem:[#allocation8 + $0xd4] ss:$8 sps:$4 sm:$0xff]  }
 0x106   :  { %1777 = vmatpush1.bf16.msra.mxu0 %v3149_v26 }
 0x107   :  { %1752 = vmatpush2.bf16.msra.mxu1 %v3146_v25  ;;  %1778 = vmatprep.subr.bf16.mxu0 %v3157_v28  ;;  %v3254_v25 = vld [vmem:[#allocation8 + $0x110] ss:$8 sps:$4 sm:$0xff]  }
 0x108   :  { %1753 = vmatprep.subr.bf16.mxu1 %v3154_v27  ;;  %v3218_v28 = vld [vmem:[#allocation8 + $0xd0] ss:$8 sps:$4 sm:$0xff]  }
 0x10a   :  { %1779 = vmatpush1.bf16.msra.mxu0 %v3155_v30 }
 0x10b   :  { %1754 = vmatpush2.bf16.msra.mxu1 %v3152_v29  ;;  %1780 = vmatprep.subr.bf16.mxu0 %v3163_v32  ;;  %v3257_v32 = vld [vmem:[#allocation8 + $0x100] ss:$8 sps:$4 sm:$0xff]  }
 0x10c   :  { %1755 = vmatprep.subr.bf16.mxu1 %v3160_v31  ;;  %v3223_v31 = vld [vmem:[#allocation8 + $0xc4] ss:$8 sps:$4 sm:$0xff]  }
 0x10e   :  { %1781 = vmatpush1.bf16.msra.mxu0 %v3161_v33  ;;  %v3262_v33 = vld [vmem:[#allocation8 + $0x1f4] ss:$8 sps:$4 sm:$0xff]  }
 0x10f   :  { %1756 = vmatpush2.bf16.msra.mxu1 %v3158_v7  ;;  %1782 = vmatprep.subr.bf16.mxu0 %v3169_v34  ;;  %v3259_v7 = vld [vmem:[#allocation8 + $0x104] ss:$8 sps:$4 sm:$0xff]   ;;  %v3260_v34 = vld [vmem:[#allocation8 + $0x1f0] ss:$8 sps:$4 sm:$0xff]  }
 0x110   :  { %1757 = vmatprep.subr.bf16.mxu1 %v3166_v51  ;;  %v3221_v51 = vld [vmem:[#allocation8 + $0xc0] ss:$8 sps:$4 sm:$0xff]  }
 0x112   :  { %1783 = vmatpush1.bf16.msra.mxu0 %v3167_v16  ;;  %v3265_v16 = vld [vmem:[#allocation8 + $0x1e4] ss:$8 sps:$4 sm:$0xff]  }
 0x113   :  { %1758 = vmatpush2.bf16.msra.mxu1 %v3164_v36  ;;  %1784 = vmatprep.subr.bf16.mxu0 %v3175_v38  ;;  %v3226_v36 = vld [vmem:[#allocation8 + $0xb4] ss:$8 sps:$4 sm:$0xff]   ;;  %v3263_v38 = vld [vmem:[#allocation8 + $0x1e0] ss:$8 sps:$4 sm:$0xff]  }
 0x114   :  { %1759 = vmatprep.subr.bf16.mxu1 %v3172_v37  ;;  %v3224_v37 = vld [vmem:[#allocation8 + $0xb0] ss:$8 sps:$4 sm:$0xff]  }
 0x116   :  { %1785 = vmatpush1.bf16.msra.mxu0 %v3173_v40  ;;  %v3268_v40 = vld [vmem:[#allocation8 + $0x1d4] ss:$8 sps:$4 sm:$0xff]  }
 0x117   :  { %1760 = vmatpush2.bf16.msra.mxu1 %v3170_v39  ;;  %1786 = vmatprep.subr.bf16.mxu0 %v3181_v42  ;;  %v3229_v39 = vld [vmem:[#allocation8 + $0xa4] ss:$8 sps:$4 sm:$0xff]   ;;  %v3266_v42 = vld [vmem:[#allocation8 + $0x1d0] ss:$8 sps:$4 sm:$0xff]  }
 0x118   :  { %1761 = vmatprep.subr.bf16.mxu1 %v3178_v41  ;;  %v3227_v41 = vld [vmem:[#allocation8 + $0xa0] ss:$8 sps:$4 sm:$0xff]  }
 0x11a   :  { %1787 = vmatpush1.bf16.msra.mxu0 %v3179_v45  ;;  %v3271_v45 = vld [vmem:[#allocation8 + $0x1c4] ss:$8 sps:$4 sm:$0xff]  }
 0x11b   :  { %1762 = vmatpush2.bf16.msra.mxu1 %v3176_v43  ;;  %1788 = vmatprep.subr.bf16.mxu0 %v3187_v48  ;;  %v3232_v43 = vld [vmem:[#allocation8 + $0x94] ss:$8 sps:$4 sm:$0xff]   ;;  %v3269_v48 = vld [vmem:[#allocation8 + $0x1c0] ss:$8 sps:$4 sm:$0xff]  }
 0x11c   :  { %1763 = vmatprep.subr.bf16.mxu1 %v3184_v46  ;;  %v3230_v46 = vld [vmem:[#allocation8 + $0x90] ss:$8 sps:$4 sm:$0xff]  }
 0x11e   :  { %1789 = vmatpush1.bf16.msra.mxu0 %v3185_v50  ;;  %v3274_v50 = vld [vmem:[#allocation8 + $0x1b4] ss:$8 sps:$4 sm:$0xff]  }
 0x11f   :  { %1764 = vmatpush2.bf16.msra.mxu1 %v3182_v49  ;;  %2219 = vmatprep.subr.bf16.mxu0 %v3190_v52  ;;  %v3235_v49 = vld [vmem:[#allocation8 + $0x84] ss:$8 sps:$4 sm:$0xff]   ;;  %v3233_v52 = vld [vmem:[#allocation8 + $0x80] ss:$8 sps:$4 sm:$0xff]  }
 0x120   :  { %2260 = vmatprep.subr.bf16.mxu1 %v3238_v60 }
 0x121   :  { %1807 = vmatmul.mubr.bf16.vlgmr.msra.gmra.mxu0 %v3516_v44  ;;  %v3244_v44 = vld [vmem:[#allocation8 + $0x154] ss:$8 sps:$4 sm:$0xff]  }
 0x122   :  { %1766 = vmatmul.mubr.bf16.vlgmr.msra.gmra.mxu1 %v3522_v15  ;;  %2220 = vmatpush1.bf16.msra.mxu0 %v3188_v53  ;;  %v3202_v15 = vld [vmem:[#allocation8 + $0x34] ss:$8 sps:$4 sm:$0xff]   ;;  %v3272_v53 = vld [vmem:[#allocation8 + $0x1b0] ss:$8 sps:$4 sm:$0xff]  }
 0x123   :  { %2221 = vmatprep.subr.bf16.mxu0 %v3193_v54  ;;  %2261 = vmatpush1.bf16.msra.mxu1 %v3236_v59  ;;  %v3277_v54 = vld [vmem:[#allocation8 + $0x1a4] ss:$8 sps:$4 sm:$0xff]   ;;  %v3278_v59 = vld [vmem:[#allocation8 + $0x190] ss:$8 sps:$4 sm:$0xff]  }
 0x124   :  { %2262 = vmatprep.subr.bf16.mxu1 %v3241_v61 }
 0x126   :  { %2222 = vmatpush1.bf16.msra.mxu0 %v3191_v55  ;;  %v3275_v55 = vld [vmem:[#allocation8 + $0x1a0] ss:$8 sps:$4 sm:$0xff]  }
 0x127   :  { %2223 = vmatprep.subr.bf16.mxu0 %v3196_v56  ;;  %2263 = vmatpush1.bf16.msra.mxu1 %v3239_v47  ;;  %v3281_v47 = vld [vmem:[#allocation8 + $0x180] ss:$8 sps:$4 sm:$0xff]  }
 0x128   :  { %2264 = vmatprep.subr.bf16.mxu1 %v3244_v44 }
 0x12a   :  { %2224 = vmatpush1.bf16.msra.mxu0 %v3194_v57 }
 0x12b   :  { %2225 = vmatprep.subr.bf16.mxu0 %v3199_v58  ;;  %2265 = vmatpush1.bf16.msra.mxu1 %v3242_v6  ;;  %v3280_v58 = vld [vmem:[#allocation8 + $0x194] ss:$8 sps:$4 sm:$0xff]  }
 0x12c   :  { %2266 = vmatprep.subr.bf16.mxu1 %v3247_v1  ;;  %v320_v6 = vld [vmem:[#allocation7] sm:$0xf] }
 0x12e   :  { %2226 = vmatpush1.bf16.msra.mxu0 %v3197_v62  ;;  %v3283_v62 = vld [vmem:[#allocation8 + $0x184] ss:$8 sps:$4 sm:$0xff]  }
 0x12f   :  { %2227 = vmatprep.subr.bf16.mxu0 %v3202_v15  ;;  %2267 = vmatpush1.bf16.msra.mxu1 %v3245_v3  ;;  %v322_v15 = vlaneseq }
 0x130   :  { %2268 = vmatprep.subr.bf16.mxu1 %v3250_v5 }
 0x131   :  { %v3540_v44 = vshrl.u32 %v322_v15, 7 }
 0x132   :  { %2228 = vmatpush1.bf16.msra.mxu0 %v3200_v63 }
 0x133   :  { %2229 = vmatprep.subr.bf16.mxu0 %v3205_v0  ;;  %2269 = vmatpush1.bf16.msra.mxu1 %v3248_v8  ;;  %v324_v63 = vsub.s32 0, %v3540_v44  ;;  %v328_v0 = vsub.s32 1, %v3540_v44 }
 0x134   :  { %2270 = vmatprep.subr.bf16.mxu1 %v3253_v14 }
 0x135   :  { %v325_v1 = vrot.slane %v320_v6, %v324_v63 }
 0x136   :  { %2230 = vmatpush1.bf16.msra.mxu0 %v3203_v2  ;;  %v329_v2 = vrot.slane %v320_v6, %v328_v0 }
 0x137   :  { %2231 = vmatprep.subr.bf16.mxu0 %v3208_v4  ;;  %2271 = vmatpush1.bf16.msra.mxu1 %v3251_v17 }
 0x138   :  { %2272 = vmatprep.subr.bf16.mxu1 %v3256_v24 }
 0x13a   :  { %2232 = vmatpush1.bf16.msra.mxu0 %v3206_v35 }
 0x13b   :  { %2233 = vmatprep.subr.bf16.mxu0 %v3211_v9  ;;  %2273 = vmatpush1.bf16.msra.mxu1 %v3254_v25 }
 0x13c   :  { %2274 = vmatprep.subr.bf16.mxu1 %v3259_v7  ;;  %v332_v7 = vsub.s32 2, %v3540_v44 }
 0x13e   :  { %2234 = vmatpush1.bf16.msra.mxu0 %v3209_v10 }
 0x13f   :  { %2235 = vmatprep.subr.bf16.mxu0 %v3214_v11  ;;  %2275 = vmatpush1.bf16.msra.mxu1 %v3257_v32  ;;  %v3286_v32 = vld [vmem:[#allocation10 + $0x70] sm:$0xff]  }
 0x140   :  { %2276 = vmatprep.subr.bf16.mxu1 %v3262_v33  ;;  %v3287_v33 = vld [vmem:[#allocation10 + $0x30] sm:$0xff]  }
 0x141   :  { %v3532_v18 = vpop.f32.mrf.mxu0 }
 0x142   :  { %v3534_v19 = vpop.f32.mrf.mxu1  ;;  %2236 = vmatpush2.bf16.msra.mxu0 %v3212_v12  ;;  %v1522_v3 = vadd.f32 %v3532_v18, %v325_v1 }
 0x143   :  { %v3536_v21 = vpop.f32.mrf.mxu0  ;;  %2237 = vmatprep.subr.bf16.mxu0 %v3217_v13  ;;  %2277 = vmatpush2.bf16.msra.mxu1 %v3260_v34  ;;  %v336_v34 = vsub.s32 3, %v3540_v44  ;;  %v2793_v44 = vld [vmem:[%s3573_s6] ss:$0 sm:$0xff] }
 0x144   :  { %v3538_v22 = vpop.f32.mrf.mxu1  ;;  %2278 = vmatprep.subr.bf16.mxu1 %v3265_v16  ;;  %v1524_v4 = vadd.f32 %v3536_v21, %v329_v2  ;;  %v1563_v5 = vadd.f32 %v3534_v19, %v1522_v3  ;;  %v3289_v16 = vld [vmem:[#allocation10 + $0x28] sm:$0xff]  }
 0x145   :  { %v1525_v26 = vpop.f32.mrf.mxu0  ;;  %v3296_v2 = vld [vmem:[#allocation10 + $0x48] sm:$0xff]  }
 0x146   :  { %v1566_v27 = vpop.f32.mrf.mxu1  ;;  %2238 = vmatpush2.bf16.msra.mxu0 %v3215_v20  ;;  %v1565_v8 = vadd.f32 %v3538_v22, %v1524_v4  ;;  %v3297_v3 = vld [vmem:[#allocation10 + $0x8] sm:$0xff]   ;;  %v3298_v4 = vld [vmem:[#allocation10 + $0x40] sm:$0xff]  }
 0x147   :  { %v1526_v29 = vpop.f32.mrf.mxu0  ;;  %2239 = vmatprep.subr.bf16.mxu0 %v3220_v23  ;;  %2279 = vmatpush2.bf16.msra.mxu1 %v3263_v38  ;;  %v337_v38 = vrot.slane %v320_v6, %v336_v34 }
 0x148   :  { %v1567_v30 = vpop.f32.mrf.mxu1  ;;  %2280 = vmatprep.subr.bf16.mxu1 %v3268_v40  ;;  %v3291_v40 = vld [vmem:[#allocation10 + $0x20] sm:$0xff]  }
 0x149   :  { %v3284_v30 = vld [vmem:[#allocation10 + $0x78] sm:$0xff]  }
 0x14a   :  { %2240 = vmatpush2.bf16.msra.mxu0 %v3218_v28 }
 0x14b   :  { %2241 = vmatprep.subr.bf16.mxu0 %v3223_v31  ;;  %2281 = vmatpush2.bf16.msra.mxu1 %v3266_v42  ;;  %v3285_v31 = vld [vmem:[#allocation10 + $0x38] sm:$0xff]  }
 0x14c   :  { %2282 = vmatprep.subr.bf16.mxu1 %v3271_v45 }
 0x14e   :  { %2242 = vmatpush2.bf16.msra.mxu0 %v3221_v51  ;;  %v3288_v51 = vld [vmem:[#allocation10 + $0x68] sm:$0xff]  }
 0x14f   :  { %2243 = vmatprep.subr.bf16.mxu0 %v3226_v36  ;;  %2283 = vmatpush2.bf16.msra.mxu1 %v3269_v48  ;;  %v333_v36 = vrot.slane %v320_v6, %v332_v7 }
 0x150   :  { %2284 = vmatprep.subr.bf16.mxu1 %v3274_v50  ;;  %v3293_v50 = vld [vmem:[#allocation10 + $0x18] sm:$0xff]  }
 0x152   :  { %2244 = vmatpush2.bf16.msra.mxu0 %v3224_v37  ;;  %v3290_v37 = vld [vmem:[#allocation10 + $0x60] sm:$0xff]  }
 0x153   :  { %2245 = vmatprep.subr.bf16.mxu0 %v3229_v39  ;;  %2285 = vmatpush2.bf16.msra.mxu1 %v3272_v53 }
 0x154   :  { %2286 = vmatprep.subr.bf16.mxu1 %v3277_v54  ;;  %v3294_v54 = vld [vmem:[#allocation10 + $0x50] sm:$0xff]  }
 0x156   :  { %2246 = vmatpush2.bf16.msra.mxu0 %v3227_v41  ;;  %v3292_v41 = vld [vmem:[#allocation10 + $0x58] sm:$0xff]  }
 0x157   :  { %2247 = vmatprep.subr.bf16.mxu0 %v3232_v43  ;;  %2287 = vmatpush2.bf16.msra.mxu1 %v3275_v55 }
 0x158   :  { %2288 = vmatprep.subr.bf16.mxu1 %v3280_v58 }
 0x15a   :  { %2248 = vmatpush2.bf16.msra.mxu0 %v3230_v46 }
 0x15b   :  { %2249 = vmatprep.subr.bf16.mxu0 %v3235_v49  ;;  %2289 = vmatpush2.bf16.msra.mxu1 %v3278_v59 }
 0x15c   :  { %2290 = vmatprep.subr.bf16.mxu1 %v3283_v62 }
 0x15e   :  { %2250 = vmatpush2.bf16.msra.mxu0 %v3233_v52 }
 0x15f   :  { %2291 = vmatpush2.bf16.msra.mxu1 %v3281_v47  ;;  %2810 = vmatprep.subr.bf16.mxu0 %v3284_v30 }
 0x162   :  { %v1644_v56 = vpop.f32.mrf.mxu1 }
 0x164   :  { %v1646_v57 = vpop.f32.mrf.mxu1 }
 0x166   :  { %v1648_v60 = vpop.f32.mrf.mxu1 }
 0x167   :  { %v3295_v60 = vld [vmem:[#allocation10 + $0x10] sm:$0xff]  }
 0x168   :  { %v1649_v61 = vpop.f32.mrf.mxu1 }
 0x181   :  { %v1603_v35 = vpop.f32.mrf.mxu0 }
 0x182   :  { %v1604_v9 = vadd.f32 %v1603_v35, %v1563_v5  ;;  %v3299_v5 = vld [vmem:[#allocation10] sm:$0xff]  }
 0x183   :  { %v1605_v10 = vpop.f32.mrf.mxu0 }
 0x184   :  { %v1645_v11 = vadd.f32 %v1644_v56, %v1604_v9  ;;  %v1606_v12 = vadd.f32 %v1605_v10, %v1565_v8 }
 0x185   :  { %v1607_v13 = vpop.f32.mrf.mxu0 }
 0x186   :  { %v1647_v14 = vadd.f32 %v1646_v57, %v1606_v12  ;;  %v1815_v17 = vmax.f32 %v1645_v11, 0.0  ;;  %v1887_v11 = vld [vmem:[%s3571_s4] sm:$0x3] }
 0x187   :  { %v1608_v20 = vpop.f32.mrf.mxu0  ;;  %v1892_v12 = vrot.slane %v1887_v11, %v324_v63  ;;  %v1896_v13 = vrot.slane %v1887_v11, %v328_v0 }
 0x188   :  { %v1816_v23 = vmax.f32 %v1647_v14, 0.0  ;;  %v1819_v25 = vpack.c.bf16 %v1815_v17, %v1815_v17 }
 0x18a   :  { %v1820_v24 = vpack.c.bf16 %v1816_v23, %v1816_v23 }
 0x18c   :  { %2251 = vmatprep.mubr.bf16.mxu0 %v1820_v24 }
 0x18d   :  { %2252 = vmatmul.mubr.bf16.vlgmr.msra.gmra.mxu0 %v1819_v25 }
 0x18e   :  { %2811 = vmatpush3.bf16.msra.mxu0 %v3285_v31 }
 0x18f   :  { %2812 = vmatprep.subr.bf16.mxu0 %v3286_v32 }
 0x192   :  { %2813 = vmatpush3.bf16.msra.mxu0 %v3287_v33 }
 0x193   :  { %2814 = vmatprep.subr.bf16.mxu0 %v3288_v51 }
 0x196   :  { %2815 = vmatpush3.bf16.msra.mxu0 %v3289_v16 }
 0x197   :  { %2816 = vmatprep.subr.bf16.mxu0 %v3290_v37 }
 0x19a   :  { %2817 = vmatpush3.bf16.msra.mxu0 %v3291_v40 }
 0x19b   :  { %2818 = vmatprep.subr.bf16.mxu0 %v3292_v41 }
 0x19e   :  { %2819 = vmatpush3.bf16.msra.mxu0 %v3293_v50 }
 0x19f   :  { %2820 = vmatprep.subr.bf16.mxu0 %v3294_v54 }
 0x1a2   :  { %v1685_v18 = vpop.f32.mrf.mxu1  ;;  %2821 = vmatpush3.bf16.msra.mxu0 %v3295_v60 }
 0x1a3   :  { %v1686_v39 = vadd.f32 %v1685_v18, %v333_v36  ;;  %2822 = vmatprep.subr.bf16.mxu0 %v3296_v2 }
 0x1a4   :  { %v1687_v21 = vpop.f32.mrf.mxu1 }
 0x1a5   :  { %v1688_v42 = vadd.f32 %v1687_v21, %v337_v38 }
 0x1a6   :  { %v1689_v26 = vpop.f32.mrf.mxu1  ;;  %2823 = vmatpush3.bf16.msra.mxu0 %v3297_v3 }
 0x1a7   :  { %2824 = vmatprep.subr.bf16.mxu0 %v3298_v4 }
 0x1a8   :  { %v1690_v19 = vpop.f32.mrf.mxu1 }
 0x1aa   :  { %2825 = vmatpush3.bf16.msra.mxu0 %v3299_v5 }
 0x1c1   :  { %v1726_v27 = vpop.f32.mrf.mxu0 }
 0x1c2   :  { %v1727_v43 = vadd.f32 %v1726_v27, %v1686_v39 }
 0x1c3   :  { %v1728_v28 = vpop.f32.mrf.mxu0 }
 0x1c4   :  { %v1729_v48 = vadd.f32 %v1728_v28, %v1688_v42 }
 0x1c5   :  { %v1730_v22 = vpop.f32.mrf.mxu0 }
 0x1c7   :  { %v1731_v29 = vpop.f32.mrf.mxu0 }
 0x1e1   :  { %v1808_v46 = vpop.f32.mrf.mxu0 }
 0x1e2   :  { %v1767_v45 = vpop.f32.mrf.mxu1 }
 0x1e3   :  { %v1768_v49 = vadd.f32 %v1767_v45, %v1727_v43  ;;  %v1810_v53 = vpop.f32.mrf.mxu0 }
 0x1e4   :  { %v1769_v52 = vpop.f32.mrf.mxu1 }
 0x1e5   :  { %v1809_v55 = vadd.f32 %v1808_v46, %v1768_v49  ;;  %v1770_v56 = vadd.f32 %v1769_v52, %v1729_v48  ;;  %v1812_v58 = vpop.f32.mrf.mxu0 }
 0x1e6   :  { %v1771_v57 = vpop.f32.mrf.mxu1 }
 0x1e7   :  { %v1811_v59 = vadd.f32 %v1810_v53, %v1770_v56  ;;  %v1817_v61 = vmax.f32 %v1809_v55, 0.0  ;;  %v1813_v47 = vpop.f32.mrf.mxu0 }
 0x1e8   :  { %v1772_v62 = vpop.f32.mrf.mxu1 }
 0x1e9   :  { %v1818_v15 = vmax.f32 %v1811_v59, 0.0  ;;  %v1821_v1 = vpack.c.bf16 %v1817_v61, %v1817_v61 }
 0x1eb   :  { %v1822_v6 = vpack.c.bf16 %v1818_v15, %v1818_v15 }
 0x1ed   :  { %2292 = vmatprep.mubr.bf16.mxu1 %v1822_v6 }
 0x1ee   :  { %2293 = vmatmul.mubr.bf16.vlgmr.msra.gmra.mxu1 %v1821_v1 }
 0x24d   :  { %v2253_v35 = vpop.f32.mrf.mxu0 }
 0x24e   :  { %v2254_v14 = vadd.f32 %v2253_v35, %v1892_v12 }
 0x24f   :  { %v2255_v8 = vpop.f32.mrf.mxu0 }
 0x250   :  { %v2256_v20 = vadd.f32 %v2255_v8, %v1896_v13 }
 0x251   :  { %v2257_v9 = vpop.f32.mrf.mxu0 }
 0x253   :  { %v2258_v10 = vpop.f32.mrf.mxu0 }
 0x2ae   :  { %v2294_v17 = vpop.f32.mrf.mxu1 }
 0x2af   :  { %v2295_v23 = vadd.f32 %v2294_v17, %v2254_v14 }
 0x2b0   :  { %v2296_v24 = vpop.f32.mrf.mxu1 }
 0x2b1   :  { %v2297_v25 = vadd.f32 %v2296_v24, %v2256_v20  ;;  %v2301_v18 = vmax.f32 %v2295_v23, 0.0 }
 0x2b2   :  { %v2298_v21 = vpop.f32.mrf.mxu1 }
 0x2b3   :  { %v2302_v26 = vmax.f32 %v2297_v25, 0.0  ;;  %v2303_v28 = vpack.c.bf16 %v2301_v18, %v2301_v18 }
 0x2b4   :  { %v2299_v19 = vpop.f32.mrf.mxu1 }
 0x2b5   :  { %v2304_v27 = vpack.c.bf16 %v2302_v26, %v2302_v26 }
 0x2b7   :  { %2472 = vmatprep.mubr.bf16.mxu0 %v2304_v27 }
 0x2b8   :  { %2473 = vmatmul.mubr.bf16.vlgmr.msra.gmra.mxu0 %v2303_v28 }
 0x378   :  { %v2826_v22 = vpop.f32.mrf.mxu0 }
 0x37a   :  { %v2827_v63 = vpop.f32.mrf.mxu0 }
 0x37b   :  { %v2828_v0 = vadd.f32 %v2827_v63, %v2826_v22 }
 0x37c   :  { %v2829_v29 = vpop.f32.mrf.mxu0 }
 0x37d   :  { %v2475_v30 = vadd.f32 %v2828_v0, %v2793_v44 }
 0x37e   :  { %v2830_v31 = vpop.f32.mrf.mxu0 }
 0x37f   :  { %2480 = vst [vmem:[#allocation11] sm:$0xff] %v2475_v30 }
 0x380   :  { %3411 = shalt.err (!%p3408_p1)
}
 0x381   :  { %2490 = dma.vmem_to_hbm [thread:$0]  %s2488_s8, 128, %s3574_s7, [#allocation4]  }
 0x382   :  { %3426 = dma.done.wait [#allocation4], 128  }
 0x383   :  { %3427 = vsyncadd [#allocation4], 4294967168 }
 0x384   :  { %2494 = vsyncpa [#allocation3], 1 }
 0x385   :  { %2495 = vsyncpa [#allocation6], 1 }
 0x386   :  { %2496 = vsyncpa [#allocation9], 1 }
 0x387   :  { %2497 = vsyncpa [#allocation4], 1 }

</bundles_post_ra>
